<compile_context>
chip_gen: v7x
topology: tpu7x:2x2x1
jax: 0.10.0
libtpu: 0.0.40
codegen_flags: <defaults>
</compile_context>

<pallas_src>
import jax
import jax.numpy as jnp
from jax import lax
from jax.experimental import pallas as pl
from jax.experimental.pallas import tpu as pltpu


def attn_vrf_kernel(x_ref, len_ref, wih_ref, bl_ref, whh_ref, aw_ref,
                    w1_ref, b1_ref, w2_ref, b2_ref, mu_ref, sig_ref,
                    out_ref, h_s, c_s, num_s, den_s):
    """One (batch tile, time chunk) step: LSTM recurrence + online attention.

    State (h, c) and the attention accumulators (num, den) are carried across
    the time-chunk grid axis in VMEM scratch; within a chunk they live in vregs.
    """
    Tc, Bt, _ = x_ref.shape
    H = whh_ref.shape[0]
    cdt = whh_ref.dtype                       # compute dtype for the MXU dots

    c_idx = pl.program_id(1)

    # ---- init carried state on the first time chunk of this batch tile ----
    @pl.when(c_idx == 0)
    def _():
        h_s[...] = jnp.zeros_like(h_s)
        c_s[...] = jnp.zeros_like(c_s)
        num_s[...] = jnp.zeros_like(num_s)
        den_s[...] = jnp.zeros_like(den_s)

    # ---- loop-invariant loads, hoisted out of the recurrence ----
    wih = wih_ref[...]                         # [F, 4H]   (gate order i,f,o,g)
    whh = whh_ref[...]                         # [H, 4H]
    bl = bl_ref[...]                           # [1, 4H]   f32
    aw = aw_ref[...]                           # [1, H]    f32 attention weights
    len_col = len_ref[...]                     # [Bt, 1]   int32 lengths
    t0 = c_idx * Tc                            # global time offset of chunk

    def step(t, carry):
        h, c, num, den = carry
        # Input projection (independent of h -> overlaps the serial chain) +
        # recurrent projection, both accumulated in f32.
        gates = (jnp.dot(x_ref[t], wih, preferred_element_type=jnp.float32)
                 + jnp.dot(h.astype(cdt), whh, preferred_element_type=jnp.float32)
                 + bl)
        # Gate columns repacked (i,f,g,o) -> (i,f,o,g): one sigmoid over 3H,
        # one tanh over H (2 EUP dispatches / step).  All elementwise in f32.
        sg = jax.nn.sigmoid(gates[:, :3 * H])
        g_g = jnp.tanh(gates[:, 3 * H:])
        i_g = sg[:, :H]
        f_g = sg[:, H:2 * H]
        o_g = sg[:, 2 * H:]
        c = f_g * c + i_g * g_g
        h = o_g * jnp.tanh(c)

        # Online masked-softmax attention (tanh-bounded logits: no max trick).
        s = jnp.sum(h * aw, axis=-1, keepdims=True)          # [Bt, 1]
        e = jnp.where((t0 + t) < len_col, jnp.exp(jnp.tanh(s)), 0.0)
        return h, c, num + e * h, den + e

    carry0 = (h_s[...], c_s[...], num_s[...], den_s[...])
    h, c, num, den = lax.fori_loop(0, Tc, step, carry0, unroll=True)
    h_s[...], c_s[...], num_s[...], den_s[...] = h, c, num, den

    # ---- finalize on the last time chunk: FC head + affine rescale ----
    @pl.when(c_idx == pl.num_programs(1) - 1)
    def _():
        rep = num / den                                        # [Bt, H]
        z1 = jnp.maximum(
            jnp.dot(rep, w1_ref[...], preferred_element_type=jnp.float32)
            + b1_ref[...], 0.0)
        z2 = (jnp.dot(z1, w2_ref[...], preferred_element_type=jnp.float32)
              + b2_ref[...])
        out_ref[...] = z2 * sig_ref[...] + mu_ref[...]         # lane-dense store


def attention_vrf_forward(x_btf, lengths, params, *, b_tile=64, t_chunk=32,
                          use_bf16=True):
    """x_btf: [B, T, F] float32 (batch_first), lengths: [B] int -> [B, 2]."""
    B, T, F = x_btf.shape
    H = params["w_hh_t"].shape[0]
    FC_H = params["w1"].shape[1]
    OUT_PAD = 128                                  # lane-dense output width
    cdt = jnp.bfloat16 if use_bf16 else jnp.float32

    # Batch tile: multiple of 16 (bf16 sublane packing), <=128 (vreg pressure),
    # clamped to the padded batch so tiny B does not waste a huge tile.
    bt = max(16, min(int(b_tile), 128))
    bt = (bt // 16) * 16
    b_min = ((B + 15) // 16) * 16
    Bt = min(bt, b_min)
    B_pad = ((B + Bt - 1) // Bt) * Bt

    # Time chunk: bounds VMEM and code size; padded steps get zero attention.
    Tc = max(1, min(int(t_chunk), T))
    T_pad = ((T + Tc - 1) // Tc) * Tc

    # Time-major input, padded; compute dtype for the MXU stream.
    x_tbf = jnp.transpose(x_btf, (1, 0, 2)).astype(cdt)          # [T, B, F]
    x_tbf = jnp.pad(x_tbf, ((0, T_pad - T), (0, B_pad - B), (0, 0)))

    # Padded rows get length 1 so den > 0 (keeps the NaN-free invariant).
    lengths_p = jnp.pad(lengths.astype(jnp.int32), ((0, B_pad - B),),
                        constant_values=1)[:, None]              # [B_pad, 1]

    # Repack gate columns (i, f, g, o) -> (i, f, o, g) so the kernel needs only
    # one sigmoid (over 3H) and one tanh (over H) per step.
    def repack(w):
        return jnp.concatenate(
            [w[..., 0:H], w[..., H:2 * H], w[..., 3 * H:4 * H], w[..., 2 * H:3 * H]],
            axis=-1)

    w_ih = repack(params["w_ih_t"]).astype(cdt)                  # [F, 4H]
    w_hh = repack(params["w_hh_t"]).astype(cdt)                  # [H, 4H]
    b_l = repack(params["b_lstm"]).astype(jnp.float32)           # [1, 4H]

    # Pad the 2-wide head (and mu/sigma) to 128 lanes for a dense output store.
    def pad_cols(a):
        return jnp.pad(a, ((0, 0), (0, OUT_PAD - a.shape[1])))

    w2p = pad_cols(params["w2"])
    b2p = pad_cols(params["b2"])
    mup = pad_cols(params["mu"])
    sigp = pad_cols(params["sigma"])

    grid = (B_pad // Bt, T_pad // Tc)     # batch tiles (parallel), T chunks (arbitrary)

    out = pl.pallas_call(
        attn_vrf_kernel,
        out_shape=jax.ShapeDtypeStruct((B_pad, OUT_PAD), jnp.float32),
        grid=grid,
        in_specs=[
            pl.BlockSpec((Tc, Bt, F), lambda i, c: (c, i, 0)),     # x chunk
            pl.BlockSpec((Bt, 1), lambda i, c: (i, 0)),            # lengths
            pl.BlockSpec((F, 4 * H), lambda i, c: (0, 0)),         # W_ih
            pl.BlockSpec((1, 4 * H), lambda i, c: (0, 0)),         # b_lstm
            pl.BlockSpec((H, 4 * H), lambda i, c: (0, 0)),         # W_hh
            pl.BlockSpec((1, H), lambda i, c: (0, 0)),             # attn_w
            pl.BlockSpec((H, FC_H), lambda i, c: (0, 0)),          # W1
            pl.BlockSpec((1, FC_H), lambda i, c: (0, 0)),          # b1
            pl.BlockSpec((FC_H, OUT_PAD), lambda i, c: (0, 0)),    # W2 (padded)
            pl.BlockSpec((1, OUT_PAD), lambda i, c: (0, 0)),       # b2 (padded)
            pl.BlockSpec((1, OUT_PAD), lambda i, c: (0, 0)),       # mu (padded)
            pl.BlockSpec((1, OUT_PAD), lambda i, c: (0, 0)),       # sigma (padded)
        ],
        out_specs=pl.BlockSpec((Bt, OUT_PAD), lambda i, c: (i, 0)),
        scratch_shapes=[
            pltpu.VMEM((Bt, H), jnp.float32),    # h
            pltpu.VMEM((Bt, H), jnp.float32),    # c
            pltpu.VMEM((Bt, H), jnp.float32),    # num = sum_t e_t * h_t
            pltpu.VMEM((Bt, 1), jnp.float32),    # den = sum_t e_t
        ],
        compiler_params=pltpu.CompilerParams(
            dimension_semantics=("parallel", "arbitrary")),
    )(x_tbf, lengths_p, w_ih, b_l, w_hh, params["attn_w"], params["w1"],
      params["b1"], w2p, b2p, mup, sigp)

    return out[:B, :2]


def reference(x_btf, lengths, params):
    """Pure-JAX f32 reference with AttentionVRF semantics (for verification)."""
    B, T, F = x_btf.shape
    H = params["w_hh_t"].shape[0]
    h = jnp.zeros((B, H), jnp.float32)
    c = jnp.zeros((B, H), jnp.float32)
    hs = []
    for t in range(T):
        x_t = x_btf[:, t, :]
        gates = x_t @ params["w_ih_t"] + h @ params["w_hh_t"] + params["b_lstm"]
        i_g = jax.nn.sigmoid(gates[:, 0 * H:1 * H])
        f_g = jax.nn.sigmoid(gates[:, 1 * H:2 * H])
        g_g = jnp.tanh(gates[:, 2 * H:3 * H])
        o_g = jax.nn.sigmoid(gates[:, 3 * H:4 * H])
        c_new = f_g * c + i_g * g_g
        h_new = o_g * jnp.tanh(c_new)
        valid = (t < lengths)[:, None]
        h = jnp.where(valid, h_new, h)
        c = jnp.where(valid, c_new, c)
        hs.append(jnp.where(valid, h_new, 0.0))        # pad_packed_sequence zeros
    hs = jnp.stack(hs, axis=1)                         # [B, T, H]

    # SelfAttention: tanh non-linearity, softmax over T, mask, renormalize.
    logits = jnp.tanh(jnp.einsum("bth,h->bt", hs, params["attn_w"][0]))
    scores = jax.nn.softmax(logits, axis=-1)
    m = (jnp.arange(T)[None, :] < lengths[:, None]).astype(jnp.float32)
    masked = scores * m
    scores = masked / masked.sum(-1, keepdims=True)
    rep = jnp.einsum("bth,bt->bh", hs, scores)

    z1 = jnp.maximum(rep @ params["w1"] + params["b1"], 0.0)
    z2 = z1 @ params["w2"] + params["b2"]
    return z2 * params["sigma"] + params["mu"]


def make_params(key, input_size, hidden_size, fc_hidden, out_size=2):
    """Deterministic parameter init (PyTorch-style uniform bounds)."""
    ks = jax.random.split(key, 12)
    k_lstm = 1.0 / jnp.sqrt(hidden_size)
    u = lambda k, shape, bound: jax.random.uniform(
        k, shape, jnp.float32, minval=-bound, maxval=bound)

    # Stored pre-transposed so forward does x @ W (canonical gate order i,f,g,o).
    w_ih_t = u(ks[0], (input_size, 4 * hidden_size), k_lstm)
    w_hh_t = u(ks[1], (hidden_size, 4 * hidden_size), k_lstm)
    b_lstm = (u(ks[2], (1, 4 * hidden_size), k_lstm)
              + u(ks[3], (1, 4 * hidden_size), k_lstm))   # b_ih + b_hh

    k1 = 1.0 / jnp.sqrt(hidden_size)
    k2 = 1.0 / jnp.sqrt(fc_hidden)
    w1 = u(ks[4], (hidden_size, fc_hidden), k1)
    b1 = u(ks[5], (1, fc_hidden), k1)
    w2 = u(ks[6], (fc_hidden, out_size), k2)
    b2 = u(ks[7], (1, out_size), k2)

    attn_w = u(ks[8], (1, hidden_size), 0.005)            # SelfAttention weights

    mu = jnp.array([[1.5, -0.75]], jnp.float32)           # scale['mu']
    sigma = jnp.array([[0.5, 2.0]], jnp.float32)          # scale['sigma']
    return dict(w_ih_t=w_ih_t, w_hh_t=w_hh_t, b_lstm=b_lstm, attn_w=attn_w,
                w1=w1, b1=b1, w2=w2, b2=b2, mu=mu, sigma=sigma)


if __name__ == "__main__":
    B, T, F = 4, 8, 4          # batch, max seq len, input_size
    H, FC_H = 32, 16           # hidden_size, fc hidden (small-shape stand-ins)

    key = jax.random.PRNGKey(0)
    k_x, k_p = jax.random.split(key)
    x = jax.random.normal(k_x, (B, T, F), jnp.float32)
    lengths = jnp.array([8, 5, 3, 6], jnp.int32)
    params = make_params(k_p, F, H, FC_H)

    ref = reference(x, lengths, params)

    # f32 path: exact-semantics check.
    out_f32 = jax.block_until_ready(
        attention_vrf_forward(x, lengths, params, use_bf16=False))
    assert out_f32.shape == (B, 2)
    assert jnp.allclose(out_f32, ref, rtol=2e-3, atol=2e-3), (out_f32, ref)

    # bf16 MXU path (default perf config): looser tolerance for bf16 rounding
    # through the recurrence.
    out_bf16 = jax.block_until_ready(
        attention_vrf_forward(x, lengths, params, use_bf16=True))
    assert out_bf16.shape == (B, 2)
    assert jnp.allclose(out_bf16, ref, rtol=3e-2, atol=3e-2), (out_bf16, ref)

    print("KERNEL_OK")
</pallas_src>

<mosaic_0001>
module attributes {stable_mosaic.version = 11 : i64} {
  func.func @attn_vrf_kernel(%arg0: i32, %arg1: i32, %arg2: memref<8x16x4xf32, #tpu.memory_space<vmem>>, %arg3: memref<16x1xi32, #tpu.memory_space<vmem>>, %arg4: memref<4x128xf32, #tpu.memory_space<vmem>>, %arg5: memref<1x128xf32, #tpu.memory_space<vmem>>, %arg6: memref<32x128xf32, #tpu.memory_space<vmem>>, %arg7: memref<1x32xf32, #tpu.memory_space<vmem>>, %arg8: memref<32x16xf32, #tpu.memory_space<vmem>>, %arg9: memref<1x16xf32, #tpu.memory_space<vmem>>, %arg10: memref<16x128xf32, #tpu.memory_space<vmem>>, %arg11: memref<1x128xf32, #tpu.memory_space<vmem>>, %arg12: memref<1x128xf32, #tpu.memory_space<vmem>>, %arg13: memref<1x128xf32, #tpu.memory_space<vmem>>, %arg14: memref<16x128xf32, #tpu.memory_space<vmem>>, %arg15: memref<16x32xf32, #tpu.memory_space<vmem>>, %arg16: memref<16x32xf32, #tpu.memory_space<vmem>>, %arg17: memref<16x32xf32, #tpu.memory_space<vmem>>, %arg18: memref<16x1xf32, #tpu.memory_space<vmem>>) attributes {dimension_semantics = [#tpu.dimension_semantics<parallel>, #tpu.dimension_semantics<arbitrary>], iteration_bounds = array<i64: 1, 1>, scalar_prefetch = 0 : i64, scratch_operands = 4 : i64, tpu.core_type = #tpu.core_type<tc>, window_params = [{transform_indices = @transform_0, window_bounds = array<i64: 8, 16, 4>}, {transform_indices = @transform_1, window_bounds = array<i64: 16, 1>}, {pipeline_mode = #tpu.pipeline_mode<synchronous>, transform_indices = @transform_2, window_bounds = array<i64: 4, 128>}, {pipeline_mode = #tpu.pipeline_mode<synchronous>, transform_indices = @transform_3, window_bounds = array<i64: 1, 128>}, {pipeline_mode = #tpu.pipeline_mode<synchronous>, transform_indices = @transform_4, window_bounds = array<i64: 32, 128>}, {pipeline_mode = #tpu.pipeline_mode<synchronous>, transform_indices = @transform_5, window_bounds = array<i64: 1, 32>}, {pipeline_mode = #tpu.pipeline_mode<synchronous>, transform_indices = @transform_6, window_bounds = array<i64: 32, 16>}, {pipeline_mode = #tpu.pipeline_mode<synchronous>, transform_indices = @transform_7, window_bounds = array<i64: 1, 16>}, {pipeline_mode = #tpu.pipeline_mode<synchronous>, transform_indices = @transform_8, window_bounds = array<i64: 16, 128>}, {pipeline_mode = #tpu.pipeline_mode<synchronous>, transform_indices = @transform_9, window_bounds = array<i64: 1, 128>}, {pipeline_mode = #tpu.pipeline_mode<synchronous>, transform_indices = @transform_10, window_bounds = array<i64: 1, 128>}, {pipeline_mode = #tpu.pipeline_mode<synchronous>, transform_indices = @transform_11, window_bounds = array<i64: 1, 128>}, {transform_indices = @transform_12, window_bounds = array<i64: 16, 128>}]} {
    %c0_i32 = arith.constant 0 : i32
    %0 = arith.cmpi eq, %arg1, %c0_i32 : i32
    %1 = arith.extui %0 : i1 to i32
    %c0_i32_0 = arith.constant 0 : i32
    %2 = arith.cmpi ne, %1, %c0_i32_0 : i32
    scf.if %2 {
      %cst_85 = arith.constant 0.000000e+00 : f32
      %332 = vector.broadcast %cst_85 : f32 to vector<16x32xf32>
      %c0_86 = arith.constant 0 : index
      %c0_87 = arith.constant 0 : index
      %333 = vector.load %arg15[%c0_86, %c0_87] : memref<16x32xf32, #tpu.memory_space<vmem>>, vector<16x32xf32>
      tpu.vector_store %arg15[%c0_86, %c0_87], %332 {strides = array<i32>} : memref<16x32xf32, #tpu.memory_space<vmem>>, vector<16x32xf32>,
      %cst_88 = arith.constant 0.000000e+00 : f32
      %334 = vector.broadcast %cst_88 : f32 to vector<16x32xf32>
      %c0_89 = arith.constant 0 : index
      %c0_90 = arith.constant 0 : index
      %335 = vector.load %arg16[%c0_89, %c0_90] : memref<16x32xf32, #tpu.memory_space<vmem>>, vector<16x32xf32>
      tpu.vector_store %arg16[%c0_89, %c0_90], %334 {strides = array<i32>} : memref<16x32xf32, #tpu.memory_space<vmem>>, vector<16x32xf32>,
      %cst_91 = arith.constant 0.000000e+00 : f32
      %336 = vector.broadcast %cst_91 : f32 to vector<16x32xf32>
      %c0_92 = arith.constant 0 : index
      %c0_93 = arith.constant 0 : index
      %337 = vector.load %arg17[%c0_92, %c0_93] : memref<16x32xf32, #tpu.memory_space<vmem>>, vector<16x32xf32>
      tpu.vector_store %arg17[%c0_92, %c0_93], %336 {strides = array<i32>} : memref<16x32xf32, #tpu.memory_space<vmem>>, vector<16x32xf32>,
      %cst_94 = arith.constant 0.000000e+00 : f32
      %338 = vector.broadcast %cst_94 : f32 to vector<16x1xf32>
      %c0_95 = arith.constant 0 : index
      %c0_96 = arith.constant 0 : index
      %339 = vector.load %arg18[%c0_95, %c0_96] : memref<16x1xf32, #tpu.memory_space<vmem>>, vector<16x1xf32>
      tpu.vector_store %arg18[%c0_95, %c0_96], %338 {strides = array<i32>} : memref<16x1xf32, #tpu.memory_space<vmem>>, vector<16x1xf32>,
    } else {
    }
    %c0 = arith.constant 0 : index
    %c0_1 = arith.constant 0 : index
    %3 = vector.load %arg4[%c0, %c0_1] : memref<4x128xf32, #tpu.memory_space<vmem>>, vector<4x128xf32>
    %c0_2 = arith.constant 0 : index
    %c0_3 = arith.constant 0 : index
    %4 = vector.load %arg6[%c0_2, %c0_3] : memref<32x128xf32, #tpu.memory_space<vmem>>, vector<32x128xf32>
    %c0_4 = arith.constant 0 : index
    %c0_5 = arith.constant 0 : index
    %5 = vector.load %arg5[%c0_4, %c0_5] : memref<1x128xf32, #tpu.memory_space<vmem>>, vector<1x128xf32>
    %c0_6 = arith.constant 0 : index
    %c0_7 = arith.constant 0 : index
    %6 = vector.load %arg7[%c0_6, %c0_7] : memref<1x32xf32, #tpu.memory_space<vmem>>, vector<1x32xf32>
    %c0_8 = arith.constant 0 : index
    %c0_9 = arith.constant 0 : index
    %7 = vector.load %arg3[%c0_8, %c0_9] : memref<16x1xi32, #tpu.memory_space<vmem>>, vector<16x1xi32>
    %c8_i32 = arith.constant 8 : i32
    %8 = arith.muli %arg1, %c8_i32 : i32
    %c0_10 = arith.constant 0 : index
    %c0_11 = arith.constant 0 : index
    %9 = vector.load %arg15[%c0_10, %c0_11] : memref<16x32xf32, #tpu.memory_space<vmem>>, vector<16x32xf32>
    %c0_12 = arith.constant 0 : index
    %c0_13 = arith.constant 0 : index
    %10 = vector.load %arg16[%c0_12, %c0_13] : memref<16x32xf32, #tpu.memory_space<vmem>>, vector<16x32xf32>
    %c0_14 = arith.constant 0 : index
    %c0_15 = arith.constant 0 : index
    %11 = vector.load %arg17[%c0_14, %c0_15] : memref<16x32xf32, #tpu.memory_space<vmem>>, vector<16x32xf32>
    %c0_16 = arith.constant 0 : index
    %c0_17 = arith.constant 0 : index
    %12 = vector.load %arg18[%c0_16, %c0_17] : memref<16x1xf32, #tpu.memory_space<vmem>>, vector<16x1xf32>
    %c0_i32_18 = arith.constant 0 : i32
    %13 = arith.index_cast %c0_i32_18 : i32 to index
    %c0_19 = arith.constant 0 : index
    %c0_20 = arith.constant 0 : index
    %14 = vector.load %arg2[%13, %c0_19, %c0_20] : memref<8x16x4xf32, #tpu.memory_space<vmem>>, vector<1x16x4xf32>
    %15 = vector.shape_cast %14 : vector<1x16x4xf32> to vector<16x4xf32>
    %cst = arith.constant dense<0.000000e+00> : vector<16x128xf32>
    %16 = tpu.matmul %15, %3, %cst {dimension_numbers = #tpu.dot_dimension_numbers<[1], [0], [0], [1], [0, 0, 1, 1], [], []>} : vector<16x4xf32>, vector<4x128xf32>, vector<16x128xf32> -> vector<16x128xf32>
    %cst_21 = arith.constant dense<0.000000e+00> : vector<16x128xf32>
    %17 = tpu.matmul %9, %4, %cst_21 {dimension_numbers = #tpu.dot_dimension_numbers<[1], [0], [0], [1], [0, 0, 1, 1], [], []>} : vector<16x32xf32>, vector<32x128xf32>, vector<16x128xf32> -> vector<16x128xf32>
    %18 = arith.addf %16, %17 : vector<16x128xf32>
    %19 = vector.broadcast %5 : vector<1x128xf32> to vector<16x128xf32>
    %20 = arith.addf %18, %19 : vector<16x128xf32>
    %21 = vector.extract_strided_slice %20 {offsets = [0, 0], sizes = [16, 96], strides = [1, 1]} : vector<16x128xf32> to vector<16x96xf32>
    %22 = arith.negf %21 : vector<16x96xf32>
    %23 = math.exp %22 : vector<16x96xf32>
    %cst_22 = arith.constant 1.000000e+00 : f32
    %24 = vector.broadcast %cst_22 : f32 to vector<16x96xf32>
    %25 = arith.addf %24, %23 : vector<16x96xf32>
    %26 = arith.divf %24, %25 : vector<16x96xf32>
    %27 = vector.extract_strided_slice %20 {offsets = [0, 96], sizes = [16, 32], strides = [1, 1]} : vector<16x128xf32> to vector<16x32xf32>
    %28 = math.tanh %27 : vector<16x32xf32>
    %29 = vector.extract_strided_slice %26 {offsets = [0, 0], sizes = [16, 32], strides = [1, 1]} : vector<16x96xf32> to vector<16x32xf32>
    %30 = vector.extract_strided_slice %26 {offsets = [0, 32], sizes = [16, 32], strides = [1, 1]} : vector<16x96xf32> to vector<16x32xf32>
    %31 = vector.extract_strided_slice %26 {offsets = [0, 64], sizes = [16, 32], strides = [1, 1]} : vector<16x96xf32> to vector<16x32xf32>
    %32 = arith.mulf %30, %10 : vector<16x32xf32>
    %33 = arith.mulf %29, %28 : vector<16x32xf32>
    %34 = arith.addf %32, %33 : vector<16x32xf32>
    %35 = math.tanh %34 : vector<16x32xf32>
    %36 = arith.mulf %31, %35 : vector<16x32xf32>
    %37 = vector.broadcast %6 : vector<1x32xf32> to vector<16x32xf32>
    %38 = arith.mulf %36, %37 : vector<16x32xf32>
    %cst_23 = arith.constant dense<0.000000e+00> : vector<16xf32>
    %39 = vector.multi_reduction <add>, %38, %cst_23 [1] : vector<16x32xf32> to vector<16xf32>
    %40 = vector.shape_cast %39 : vector<16xf32> to vector<16x1xf32>
    %41 = arith.addi %8, %c0_i32_18 : i32
    %42 = vector.broadcast %41 : i32 to vector<16x1xi32>
    %43 = arith.cmpi slt, %42, %7 : vector<16x1xi32>
    %44 = math.tanh %40 : vector<16x1xf32>
    %45 = math.exp %44 : vector<16x1xf32>
    %cst_24 = arith.constant 0.000000e+00 : f32
    %46 = vector.broadcast %cst_24 : f32 to vector<16x1xf32>
    %47 = arith.select %43, %45, %46 : vector<16x1xi1>, vector<16x1xf32>
    %48 = vector.broadcast %47 : vector<16x1xf32> to vector<16x32xf32>
    %49 = arith.mulf %48, %36 : vector<16x32xf32>
    %50 = arith.addf %11, %49 : vector<16x32xf32>
    %51 = arith.addf %12, %47 : vector<16x1xf32>
    %c1_i32 = arith.constant 1 : i32
    %52 = arith.index_cast %c1_i32 : i32 to index
    %c0_25 = arith.constant 0 : index
    %c0_26 = arith.constant 0 : index
    %53 = vector.load %arg2[%52, %c0_25, %c0_26] : memref<8x16x4xf32, #tpu.memory_space<vmem>>, vector<1x16x4xf32>
    %54 = vector.shape_cast %53 : vector<1x16x4xf32> to vector<16x4xf32>
    %cst_27 = arith.constant dense<0.000000e+00> : vector<16x128xf32>
    %55 = tpu.matmul %54, %3, %cst_27 {dimension_numbers = #tpu.dot_dimension_numbers<[1], [0], [0], [1], [0, 0, 1, 1], [], []>} : vector<16x4xf32>, vector<4x128xf32>, vector<16x128xf32> -> vector<16x128xf32>
    %cst_28 = arith.constant dense<0.000000e+00> : vector<16x128xf32>
    %56 = tpu.matmul %36, %4, %cst_28 {dimension_numbers = #tpu.dot_dimension_numbers<[1], [0], [0], [1], [0, 0, 1, 1], [], []>} : vector<16x32xf32>, vector<32x128xf32>, vector<16x128xf32> -> vector<16x128xf32>
    %57 = arith.addf %55, %56 : vector<16x128xf32>
    %58 = vector.broadcast %5 : vector<1x128xf32> to vector<16x128xf32>
    %59 = arith.addf %57, %58 : vector<16x128xf32>
    %60 = vector.extract_strided_slice %59 {offsets = [0, 0], sizes = [16, 96], strides = [1, 1]} : vector<16x128xf32> to vector<16x96xf32>
    %61 = arith.negf %60 : vector<16x96xf32>
    %62 = math.exp %61 : vector<16x96xf32>
    %cst_29 = arith.constant 1.000000e+00 : f32
    %63 = vector.broadcast %cst_29 : f32 to vector<16x96xf32>
    %64 = arith.addf %63, %62 : vector<16x96xf32>
    %65 = arith.divf %63, %64 : vector<16x96xf32>
    %66 = vector.extract_strided_slice %59 {offsets = [0, 96], sizes = [16, 32], strides = [1, 1]} : vector<16x128xf32> to vector<16x32xf32>
    %67 = math.tanh %66 : vector<16x32xf32>
    %68 = vector.extract_strided_slice %65 {offsets = [0, 0], sizes = [16, 32], strides = [1, 1]} : vector<16x96xf32> to vector<16x32xf32>
    %69 = vector.extract_strided_slice %65 {offsets = [0, 32], sizes = [16, 32], strides = [1, 1]} : vector<16x96xf32> to vector<16x32xf32>
    %70 = vector.extract_strided_slice %65 {offsets = [0, 64], sizes = [16, 32], strides = [1, 1]} : vector<16x96xf32> to vector<16x32xf32>
    %71 = arith.mulf %69, %34 : vector<16x32xf32>
    %72 = arith.mulf %68, %67 : vector<16x32xf32>
    %73 = arith.addf %71, %72 : vector<16x32xf32>
    %74 = math.tanh %73 : vector<16x32xf32>
    %75 = arith.mulf %70, %74 : vector<16x32xf32>
    %76 = vector.broadcast %6 : vector<1x32xf32> to vector<16x32xf32>
    %77 = arith.mulf %75, %76 : vector<16x32xf32>
    %cst_30 = arith.constant dense<0.000000e+00> : vector<16xf32>
    %78 = vector.multi_reduction <add>, %77, %cst_30 [1] : vector<16x32xf32> to vector<16xf32>
    %79 = vector.shape_cast %78 : vector<16xf32> to vector<16x1xf32>
    %80 = arith.addi %8, %c1_i32 : i32
    %81 = vector.broadcast %80 : i32 to vector<16x1xi32>
    %82 = arith.cmpi slt, %81, %7 : vector<16x1xi32>
    %83 = math.tanh %79 : vector<16x1xf32>
    %84 = math.exp %83 : vector<16x1xf32>
    %cst_31 = arith.constant 0.000000e+00 : f32
    %85 = vector.broadcast %cst_31 : f32 to vector<16x1xf32>
    %86 = arith.select %82, %84, %85 : vector<16x1xi1>, vector<16x1xf32>
    %87 = vector.broadcast %86 : vector<16x1xf32> to vector<16x32xf32>
    %88 = arith.mulf %87, %75 : vector<16x32xf32>
    %89 = arith.addf %50, %88 : vector<16x32xf32>
    %90 = arith.addf %51, %86 : vector<16x1xf32>
    %c2_i32 = arith.constant 2 : i32
    %91 = arith.index_cast %c2_i32 : i32 to index
    %c0_32 = arith.constant 0 : index
    %c0_33 = arith.constant 0 : index
    %92 = vector.load %arg2[%91, %c0_32, %c0_33] : memref<8x16x4xf32, #tpu.memory_space<vmem>>, vector<1x16x4xf32>
    %93 = vector.shape_cast %92 : vector<1x16x4xf32> to vector<16x4xf32>
    %cst_34 = arith.constant dense<0.000000e+00> : vector<16x128xf32>
    %94 = tpu.matmul %93, %3, %cst_34 {dimension_numbers = #tpu.dot_dimension_numbers<[1], [0], [0], [1], [0, 0, 1, 1], [], []>} : vector<16x4xf32>, vector<4x128xf32>, vector<16x128xf32> -> vector<16x128xf32>
    %cst_35 = arith.constant dense<0.000000e+00> : vector<16x128xf32>
    %95 = tpu.matmul %75, %4, %cst_35 {dimension_numbers = #tpu.dot_dimension_numbers<[1], [0], [0], [1], [0, 0, 1, 1], [], []>} : vector<16x32xf32>, vector<32x128xf32>, vector<16x128xf32> -> vector<16x128xf32>
    %96 = arith.addf %94, %95 : vector<16x128xf32>
    %97 = vector.broadcast %5 : vector<1x128xf32> to vector<16x128xf32>
    %98 = arith.addf %96, %97 : vector<16x128xf32>
    %99 = vector.extract_strided_slice %98 {offsets = [0, 0], sizes = [16, 96], strides = [1, 1]} : vector<16x128xf32> to vector<16x96xf32>
    %100 = arith.negf %99 : vector<16x96xf32>
    %101 = math.exp %100 : vector<16x96xf32>
    %cst_36 = arith.constant 1.000000e+00 : f32
    %102 = vector.broadcast %cst_36 : f32 to vector<16x96xf32>
    %103 = arith.addf %102, %101 : vector<16x96xf32>
    %104 = arith.divf %102, %103 : vector<16x96xf32>
    %105 = vector.extract_strided_slice %98 {offsets = [0, 96], sizes = [16, 32], strides = [1, 1]} : vector<16x128xf32> to vector<16x32xf32>
    %106 = math.tanh %105 : vector<16x32xf32>
    %107 = vector.extract_strided_slice %104 {offsets = [0, 0], sizes = [16, 32], strides = [1, 1]} : vector<16x96xf32> to vector<16x32xf32>
    %108 = vector.extract_strided_slice %104 {offsets = [0, 32], sizes = [16, 32], strides = [1, 1]} : vector<16x96xf32> to vector<16x32xf32>
    %109 = vector.extract_strided_slice %104 {offsets = [0, 64], sizes = [16, 32], strides = [1, 1]} : vector<16x96xf32> to vector<16x32xf32>
    %110 = arith.mulf %108, %73 : vector<16x32xf32>
    %111 = arith.mulf %107, %106 : vector<16x32xf32>
    %112 = arith.addf %110, %111 : vector<16x32xf32>
    %113 = math.tanh %112 : vector<16x32xf32>
    %114 = arith.mulf %109, %113 : vector<16x32xf32>
    %115 = vector.broadcast %6 : vector<1x32xf32> to vector<16x32xf32>
    %116 = arith.mulf %114, %115 : vector<16x32xf32>
    %cst_37 = arith.constant dense<0.000000e+00> : vector<16xf32>
    %117 = vector.multi_reduction <add>, %116, %cst_37 [1] : vector<16x32xf32> to vector<16xf32>
    %118 = vector.shape_cast %117 : vector<16xf32> to vector<16x1xf32>
    %119 = arith.addi %8, %c2_i32 : i32
    %120 = vector.broadcast %119 : i32 to vector<16x1xi32>
    %121 = arith.cmpi slt, %120, %7 : vector<16x1xi32>
    %122 = math.tanh %118 : vector<16x1xf32>
    %123 = math.exp %122 : vector<16x1xf32>
    %cst_38 = arith.constant 0.000000e+00 : f32
    %124 = vector.broadcast %cst_38 : f32 to vector<16x1xf32>
    %125 = arith.select %121, %123, %124 : vector<16x1xi1>, vector<16x1xf32>
    %126 = vector.broadcast %125 : vector<16x1xf32> to vector<16x32xf32>
    %127 = arith.mulf %126, %114 : vector<16x32xf32>
    %128 = arith.addf %89, %127 : vector<16x32xf32>
    %129 = arith.addf %90, %125 : vector<16x1xf32>
    %c3_i32 = arith.constant 3 : i32
    %130 = arith.index_cast %c3_i32 : i32 to index
    %c0_39 = arith.constant 0 : index
    %c0_40 = arith.constant 0 : index
    %131 = vector.load %arg2[%130, %c0_39, %c0_40] : memref<8x16x4xf32, #tpu.memory_space<vmem>>, vector<1x16x4xf32>
    %132 = vector.shape_cast %131 : vector<1x16x4xf32> to vector<16x4xf32>
    %cst_41 = arith.constant dense<0.000000e+00> : vector<16x128xf32>
    %133 = tpu.matmul %132, %3, %cst_41 {dimension_numbers = #tpu.dot_dimension_numbers<[1], [0], [0], [1], [0, 0, 1, 1], [], []>} : vector<16x4xf32>, vector<4x128xf32>, vector<16x128xf32> -> vector<16x128xf32>
    %cst_42 = arith.constant dense<0.000000e+00> : vector<16x128xf32>
    %134 = tpu.matmul %114, %4, %cst_42 {dimension_numbers = #tpu.dot_dimension_numbers<[1], [0], [0], [1], [0, 0, 1, 1], [], []>} : vector<16x32xf32>, vector<32x128xf32>, vector<16x128xf32> -> vector<16x128xf32>
    %135 = arith.addf %133, %134 : vector<16x128xf32>
    %136 = vector.broadcast %5 : vector<1x128xf32> to vector<16x128xf32>
    %137 = arith.addf %135, %136 : vector<16x128xf32>
    %138 = vector.extract_strided_slice %137 {offsets = [0, 0], sizes = [16, 96], strides = [1, 1]} : vector<16x128xf32> to vector<16x96xf32>
    %139 = arith.negf %138 : vector<16x96xf32>
    %140 = math.exp %139 : vector<16x96xf32>
    %cst_43 = arith.constant 1.000000e+00 : f32
    %141 = vector.broadcast %cst_43 : f32 to vector<16x96xf32>
    %142 = arith.addf %141, %140 : vector<16x96xf32>
    %143 = arith.divf %141, %142 : vector<16x96xf32>
    %144 = vector.extract_strided_slice %137 {offsets = [0, 96], sizes = [16, 32], strides = [1, 1]} : vector<16x128xf32> to vector<16x32xf32>
    %145 = math.tanh %144 : vector<16x32xf32>
    %146 = vector.extract_strided_slice %143 {offsets = [0, 0], sizes = [16, 32], strides = [1, 1]} : vector<16x96xf32> to vector<16x32xf32>
    %147 = vector.extract_strided_slice %143 {offsets = [0, 32], sizes = [16, 32], strides = [1, 1]} : vector<16x96xf32> to vector<16x32xf32>
    %148 = vector.extract_strided_slice %143 {offsets = [0, 64], sizes = [16, 32], strides = [1, 1]} : vector<16x96xf32> to vector<16x32xf32>
    %149 = arith.mulf %147, %112 : vector<16x32xf32>
    %150 = arith.mulf %146, %145 : vector<16x32xf32>
    %151 = arith.addf %149, %150 : vector<16x32xf32>
    %152 = math.tanh %151 : vector<16x32xf32>
    %153 = arith.mulf %148, %152 : vector<16x32xf32>
    %154 = vector.broadcast %6 : vector<1x32xf32> to vector<16x32xf32>
    %155 = arith.mulf %153, %154 : vector<16x32xf32>
    %cst_44 = arith.constant dense<0.000000e+00> : vector<16xf32>
    %156 = vector.multi_reduction <add>, %155, %cst_44 [1] : vector<16x32xf32> to vector<16xf32>
    %157 = vector.shape_cast %156 : vector<16xf32> to vector<16x1xf32>
    %158 = arith.addi %8, %c3_i32 : i32
    %159 = vector.broadcast %158 : i32 to vector<16x1xi32>
    %160 = arith.cmpi slt, %159, %7 : vector<16x1xi32>
    %161 = math.tanh %157 : vector<16x1xf32>
    %162 = math.exp %161 : vector<16x1xf32>
    %cst_45 = arith.constant 0.000000e+00 : f32
    %163 = vector.broadcast %cst_45 : f32 to vector<16x1xf32>
    %164 = arith.select %160, %162, %163 : vector<16x1xi1>, vector<16x1xf32>
    %165 = vector.broadcast %164 : vector<16x1xf32> to vector<16x32xf32>
    %166 = arith.mulf %165, %153 : vector<16x32xf32>
    %167 = arith.addf %128, %166 : vector<16x32xf32>
    %168 = arith.addf %129, %164 : vector<16x1xf32>
    %c4_i32 = arith.constant 4 : i32
    %169 = arith.index_cast %c4_i32 : i32 to index
    %c0_46 = arith.constant 0 : index
    %c0_47 = arith.constant 0 : index
    %170 = vector.load %arg2[%169, %c0_46, %c0_47] : memref<8x16x4xf32, #tpu.memory_space<vmem>>, vector<1x16x4xf32>
    %171 = vector.shape_cast %170 : vector<1x16x4xf32> to vector<16x4xf32>
    %cst_48 = arith.constant dense<0.000000e+00> : vector<16x128xf32>
    %172 = tpu.matmul %171, %3, %cst_48 {dimension_numbers = #tpu.dot_dimension_numbers<[1], [0], [0], [1], [0, 0, 1, 1], [], []>} : vector<16x4xf32>, vector<4x128xf32>, vector<16x128xf32> -> vector<16x128xf32>
    %cst_49 = arith.constant dense<0.000000e+00> : vector<16x128xf32>
    %173 = tpu.matmul %153, %4, %cst_49 {dimension_numbers = #tpu.dot_dimension_numbers<[1], [0], [0], [1], [0, 0, 1, 1], [], []>} : vector<16x32xf32>, vector<32x128xf32>, vector<16x128xf32> -> vector<16x128xf32>
    %174 = arith.addf %172, %173 : vector<16x128xf32>
    %175 = vector.broadcast %5 : vector<1x128xf32> to vector<16x128xf32>
    %176 = arith.addf %174, %175 : vector<16x128xf32>
    %177 = vector.extract_strided_slice %176 {offsets = [0, 0], sizes = [16, 96], strides = [1, 1]} : vector<16x128xf32> to vector<16x96xf32>
    %178 = arith.negf %177 : vector<16x96xf32>
    %179 = math.exp %178 : vector<16x96xf32>
    %cst_50 = arith.constant 1.000000e+00 : f32
    %180 = vector.broadcast %cst_50 : f32 to vector<16x96xf32>
    %181 = arith.addf %180, %179 : vector<16x96xf32>
    %182 = arith.divf %180, %181 : vector<16x96xf32>
    %183 = vector.extract_strided_slice %176 {offsets = [0, 96], sizes = [16, 32], strides = [1, 1]} : vector<16x128xf32> to vector<16x32xf32>
    %184 = math.tanh %183 : vector<16x32xf32>
    %185 = vector.extract_strided_slice %182 {offsets = [0, 0], sizes = [16, 32], strides = [1, 1]} : vector<16x96xf32> to vector<16x32xf32>
    %186 = vector.extract_strided_slice %182 {offsets = [0, 32], sizes = [16, 32], strides = [1, 1]} : vector<16x96xf32> to vector<16x32xf32>
    %187 = vector.extract_strided_slice %182 {offsets = [0, 64], sizes = [16, 32], strides = [1, 1]} : vector<16x96xf32> to vector<16x32xf32>
    %188 = arith.mulf %186, %151 : vector<16x32xf32>
    %189 = arith.mulf %185, %184 : vector<16x32xf32>
    %190 = arith.addf %188, %189 : vector<16x32xf32>
    %191 = math.tanh %190 : vector<16x32xf32>
    %192 = arith.mulf %187, %191 : vector<16x32xf32>
    %193 = vector.broadcast %6 : vector<1x32xf32> to vector<16x32xf32>
    %194 = arith.mulf %192, %193 : vector<16x32xf32>
    %cst_51 = arith.constant dense<0.000000e+00> : vector<16xf32>
    %195 = vector.multi_reduction <add>, %194, %cst_51 [1] : vector<16x32xf32> to vector<16xf32>
    %196 = vector.shape_cast %195 : vector<16xf32> to vector<16x1xf32>
    %197 = arith.addi %8, %c4_i32 : i32
    %198 = vector.broadcast %197 : i32 to vector<16x1xi32>
    %199 = arith.cmpi slt, %198, %7 : vector<16x1xi32>
    %200 = math.tanh %196 : vector<16x1xf32>
    %201 = math.exp %200 : vector<16x1xf32>
    %cst_52 = arith.constant 0.000000e+00 : f32
    %202 = vector.broadcast %cst_52 : f32 to vector<16x1xf32>
    %203 = arith.select %199, %201, %202 : vector<16x1xi1>, vector<16x1xf32>
    %204 = vector.broadcast %203 : vector<16x1xf32> to vector<16x32xf32>
    %205 = arith.mulf %204, %192 : vector<16x32xf32>
    %206 = arith.addf %167, %205 : vector<16x32xf32>
    %207 = arith.addf %168, %203 : vector<16x1xf32>
    %c5_i32 = arith.constant 5 : i32
    %208 = arith.index_cast %c5_i32 : i32 to index
    %c0_53 = arith.constant 0 : index
    %c0_54 = arith.constant 0 : index
    %209 = vector.load %arg2[%208, %c0_53, %c0_54] : memref<8x16x4xf32, #tpu.memory_space<vmem>>, vector<1x16x4xf32>
    %210 = vector.shape_cast %209 : vector<1x16x4xf32> to vector<16x4xf32>
    %cst_55 = arith.constant dense<0.000000e+00> : vector<16x128xf32>
    %211 = tpu.matmul %210, %3, %cst_55 {dimension_numbers = #tpu.dot_dimension_numbers<[1], [0], [0], [1], [0, 0, 1, 1], [], []>} : vector<16x4xf32>, vector<4x128xf32>, vector<16x128xf32> -> vector<16x128xf32>
    %cst_56 = arith.constant dense<0.000000e+00> : vector<16x128xf32>
    %212 = tpu.matmul %192, %4, %cst_56 {dimension_numbers = #tpu.dot_dimension_numbers<[1], [0], [0], [1], [0, 0, 1, 1], [], []>} : vector<16x32xf32>, vector<32x128xf32>, vector<16x128xf32> -> vector<16x128xf32>
    %213 = arith.addf %211, %212 : vector<16x128xf32>
    %214 = vector.broadcast %5 : vector<1x128xf32> to vector<16x128xf32>
    %215 = arith.addf %213, %214 : vector<16x128xf32>
    %216 = vector.extract_strided_slice %215 {offsets = [0, 0], sizes = [16, 96], strides = [1, 1]} : vector<16x128xf32> to vector<16x96xf32>
    %217 = arith.negf %216 : vector<16x96xf32>
    %218 = math.exp %217 : vector<16x96xf32>
    %cst_57 = arith.constant 1.000000e+00 : f32
    %219 = vector.broadcast %cst_57 : f32 to vector<16x96xf32>
    %220 = arith.addf %219, %218 : vector<16x96xf32>
    %221 = arith.divf %219, %220 : vector<16x96xf32>
    %222 = vector.extract_strided_slice %215 {offsets = [0, 96], sizes = [16, 32], strides = [1, 1]} : vector<16x128xf32> to vector<16x32xf32>
    %223 = math.tanh %222 : vector<16x32xf32>
    %224 = vector.extract_strided_slice %221 {offsets = [0, 0], sizes = [16, 32], strides = [1, 1]} : vector<16x96xf32> to vector<16x32xf32>
    %225 = vector.extract_strided_slice %221 {offsets = [0, 32], sizes = [16, 32], strides = [1, 1]} : vector<16x96xf32> to vector<16x32xf32>
    %226 = vector.extract_strided_slice %221 {offsets = [0, 64], sizes = [16, 32], strides = [1, 1]} : vector<16x96xf32> to vector<16x32xf32>
    %227 = arith.mulf %225, %190 : vector<16x32xf32>
    %228 = arith.mulf %224, %223 : vector<16x32xf32>
    %229 = arith.addf %227, %228 : vector<16x32xf32>
    %230 = math.tanh %229 : vector<16x32xf32>
    %231 = arith.mulf %226, %230 : vector<16x32xf32>
    %232 = vector.broadcast %6 : vector<1x32xf32> to vector<16x32xf32>
    %233 = arith.mulf %231, %232 : vector<16x32xf32>
    %cst_58 = arith.constant dense<0.000000e+00> : vector<16xf32>
    %234 = vector.multi_reduction <add>, %233, %cst_58 [1] : vector<16x32xf32> to vector<16xf32>
    %235 = vector.shape_cast %234 : vector<16xf32> to vector<16x1xf32>
    %236 = arith.addi %8, %c5_i32 : i32
    %237 = vector.broadcast %236 : i32 to vector<16x1xi32>
    %238 = arith.cmpi slt, %237, %7 : vector<16x1xi32>
    %239 = math.tanh %235 : vector<16x1xf32>
    %240 = math.exp %239 : vector<16x1xf32>
    %cst_59 = arith.constant 0.000000e+00 : f32
    %241 = vector.broadcast %cst_59 : f32 to vector<16x1xf32>
    %242 = arith.select %238, %240, %241 : vector<16x1xi1>, vector<16x1xf32>
    %243 = vector.broadcast %242 : vector<16x1xf32> to vector<16x32xf32>
    %244 = arith.mulf %243, %231 : vector<16x32xf32>
    %245 = arith.addf %206, %244 : vector<16x32xf32>
    %246 = arith.addf %207, %242 : vector<16x1xf32>
    %c6_i32 = arith.constant 6 : i32
    %247 = arith.index_cast %c6_i32 : i32 to index
    %c0_60 = arith.constant 0 : index
    %c0_61 = arith.constant 0 : index
    %248 = vector.load %arg2[%247, %c0_60, %c0_61] : memref<8x16x4xf32, #tpu.memory_space<vmem>>, vector<1x16x4xf32>
    %249 = vector.shape_cast %248 : vector<1x16x4xf32> to vector<16x4xf32>
    %cst_62 = arith.constant dense<0.000000e+00> : vector<16x128xf32>
    %250 = tpu.matmul %249, %3, %cst_62 {dimension_numbers = #tpu.dot_dimension_numbers<[1], [0], [0], [1], [0, 0, 1, 1], [], []>} : vector<16x4xf32>, vector<4x128xf32>, vector<16x128xf32> -> vector<16x128xf32>
    %cst_63 = arith.constant dense<0.000000e+00> : vector<16x128xf32>
    %251 = tpu.matmul %231, %4, %cst_63 {dimension_numbers = #tpu.dot_dimension_numbers<[1], [0], [0], [1], [0, 0, 1, 1], [], []>} : vector<16x32xf32>, vector<32x128xf32>, vector<16x128xf32> -> vector<16x128xf32>
    %252 = arith.addf %250, %251 : vector<16x128xf32>
    %253 = vector.broadcast %5 : vector<1x128xf32> to vector<16x128xf32>
    %254 = arith.addf %252, %253 : vector<16x128xf32>
    %255 = vector.extract_strided_slice %254 {offsets = [0, 0], sizes = [16, 96], strides = [1, 1]} : vector<16x128xf32> to vector<16x96xf32>
    %256 = arith.negf %255 : vector<16x96xf32>
    %257 = math.exp %256 : vector<16x96xf32>
    %cst_64 = arith.constant 1.000000e+00 : f32
    %258 = vector.broadcast %cst_64 : f32 to vector<16x96xf32>
    %259 = arith.addf %258, %257 : vector<16x96xf32>
    %260 = arith.divf %258, %259 : vector<16x96xf32>
    %261 = vector.extract_strided_slice %254 {offsets = [0, 96], sizes = [16, 32], strides = [1, 1]} : vector<16x128xf32> to vector<16x32xf32>
    %262 = math.tanh %261 : vector<16x32xf32>
    %263 = vector.extract_strided_slice %260 {offsets = [0, 0], sizes = [16, 32], strides = [1, 1]} : vector<16x96xf32> to vector<16x32xf32>
    %264 = vector.extract_strided_slice %260 {offsets = [0, 32], sizes = [16, 32], strides = [1, 1]} : vector<16x96xf32> to vector<16x32xf32>
    %265 = vector.extract_strided_slice %260 {offsets = [0, 64], sizes = [16, 32], strides = [1, 1]} : vector<16x96xf32> to vector<16x32xf32>
    %266 = arith.mulf %264, %229 : vector<16x32xf32>
    %267 = arith.mulf %263, %262 : vector<16x32xf32>
    %268 = arith.addf %266, %267 : vector<16x32xf32>
    %269 = math.tanh %268 : vector<16x32xf32>
    %270 = arith.mulf %265, %269 : vector<16x32xf32>
    %271 = vector.broadcast %6 : vector<1x32xf32> to vector<16x32xf32>
    %272 = arith.mulf %270, %271 : vector<16x32xf32>
    %cst_65 = arith.constant dense<0.000000e+00> : vector<16xf32>
    %273 = vector.multi_reduction <add>, %272, %cst_65 [1] : vector<16x32xf32> to vector<16xf32>
    %274 = vector.shape_cast %273 : vector<16xf32> to vector<16x1xf32>
    %275 = arith.addi %8, %c6_i32 : i32
    %276 = vector.broadcast %275 : i32 to vector<16x1xi32>
    %277 = arith.cmpi slt, %276, %7 : vector<16x1xi32>
    %278 = math.tanh %274 : vector<16x1xf32>
    %279 = math.exp %278 : vector<16x1xf32>
    %cst_66 = arith.constant 0.000000e+00 : f32
    %280 = vector.broadcast %cst_66 : f32 to vector<16x1xf32>
    %281 = arith.select %277, %279, %280 : vector<16x1xi1>, vector<16x1xf32>
    %282 = vector.broadcast %281 : vector<16x1xf32> to vector<16x32xf32>
    %283 = arith.mulf %282, %270 : vector<16x32xf32>
    %284 = arith.addf %245, %283 : vector<16x32xf32>
    %285 = arith.addf %246, %281 : vector<16x1xf32>
    %c7_i32 = arith.constant 7 : i32
    %286 = arith.index_cast %c7_i32 : i32 to index
    %c0_67 = arith.constant 0 : index
    %c0_68 = arith.constant 0 : index
    %287 = vector.load %arg2[%286, %c0_67, %c0_68] : memref<8x16x4xf32, #tpu.memory_space<vmem>>, vector<1x16x4xf32>
    %288 = vector.shape_cast %287 : vector<1x16x4xf32> to vector<16x4xf32>
    %cst_69 = arith.constant dense<0.000000e+00> : vector<16x128xf32>
    %289 = tpu.matmul %288, %3, %cst_69 {dimension_numbers = #tpu.dot_dimension_numbers<[1], [0], [0], [1], [0, 0, 1, 1], [], []>} : vector<16x4xf32>, vector<4x128xf32>, vector<16x128xf32> -> vector<16x128xf32>
    %cst_70 = arith.constant dense<0.000000e+00> : vector<16x128xf32>
    %290 = tpu.matmul %270, %4, %cst_70 {dimension_numbers = #tpu.dot_dimension_numbers<[1], [0], [0], [1], [0, 0, 1, 1], [], []>} : vector<16x32xf32>, vector<32x128xf32>, vector<16x128xf32> -> vector<16x128xf32>
    %291 = arith.addf %289, %290 : vector<16x128xf32>
    %292 = vector.broadcast %5 : vector<1x128xf32> to vector<16x128xf32>
    %293 = arith.addf %291, %292 : vector<16x128xf32>
    %294 = vector.extract_strided_slice %293 {offsets = [0, 0], sizes = [16, 96], strides = [1, 1]} : vector<16x128xf32> to vector<16x96xf32>
    %295 = arith.negf %294 : vector<16x96xf32>
    %296 = math.exp %295 : vector<16x96xf32>
    %cst_71 = arith.constant 1.000000e+00 : f32
    %297 = vector.broadcast %cst_71 : f32 to vector<16x96xf32>
    %298 = arith.addf %297, %296 : vector<16x96xf32>
    %299 = arith.divf %297, %298 : vector<16x96xf32>
    %300 = vector.extract_strided_slice %293 {offsets = [0, 96], sizes = [16, 32], strides = [1, 1]} : vector<16x128xf32> to vector<16x32xf32>
    %301 = math.tanh %300 : vector<16x32xf32>
    %302 = vector.extract_strided_slice %299 {offsets = [0, 0], sizes = [16, 32], strides = [1, 1]} : vector<16x96xf32> to vector<16x32xf32>
    %303 = vector.extract_strided_slice %299 {offsets = [0, 32], sizes = [16, 32], strides = [1, 1]} : vector<16x96xf32> to vector<16x32xf32>
    %304 = vector.extract_strided_slice %299 {offsets = [0, 64], sizes = [16, 32], strides = [1, 1]} : vector<16x96xf32> to vector<16x32xf32>
    %305 = arith.mulf %303, %268 : vector<16x32xf32>
    %306 = arith.mulf %302, %301 : vector<16x32xf32>
    %307 = arith.addf %305, %306 : vector<16x32xf32>
    %308 = math.tanh %307 : vector<16x32xf32>
    %309 = arith.mulf %304, %308 : vector<16x32xf32>
    %310 = vector.broadcast %6 : vector<1x32xf32> to vector<16x32xf32>
    %311 = arith.mulf %309, %310 : vector<16x32xf32>
    %cst_72 = arith.constant dense<0.000000e+00> : vector<16xf32>
    %312 = vector.multi_reduction <add>, %311, %cst_72 [1] : vector<16x32xf32> to vector<16xf32>
    %313 = vector.shape_cast %312 : vector<16xf32> to vector<16x1xf32>
    %314 = arith.addi %8, %c7_i32 : i32
    %315 = vector.broadcast %314 : i32 to vector<16x1xi32>
    %316 = arith.cmpi slt, %315, %7 : vector<16x1xi32>
    %317 = math.tanh %313 : vector<16x1xf32>
    %318 = math.exp %317 : vector<16x1xf32>
    %cst_73 = arith.constant 0.000000e+00 : f32
    %319 = vector.broadcast %cst_73 : f32 to vector<16x1xf32>
    %320 = arith.select %316, %318, %319 : vector<16x1xi1>, vector<16x1xf32>
    %321 = vector.broadcast %320 : vector<16x1xf32> to vector<16x32xf32>
    %322 = arith.mulf %321, %309 : vector<16x32xf32>
    %323 = arith.addf %284, %322 : vector<16x32xf32>
    %324 = arith.addf %285, %320 : vector<16x1xf32>
    %c8_i32_74 = arith.constant 8 : i32
    %c0_75 = arith.constant 0 : index
    %c0_76 = arith.constant 0 : index
    %325 = vector.load %arg15[%c0_75, %c0_76] : memref<16x32xf32, #tpu.memory_space<vmem>>, vector<16x32xf32>
    tpu.vector_store %arg15[%c0_75, %c0_76], %309 {strides = array<i32>} : memref<16x32xf32, #tpu.memory_space<vmem>>, vector<16x32xf32>,
    %c0_77 = arith.constant 0 : index
    %c0_78 = arith.constant 0 : index
    %326 = vector.load %arg16[%c0_77, %c0_78] : memref<16x32xf32, #tpu.memory_space<vmem>>, vector<16x32xf32>
    tpu.vector_store %arg16[%c0_77, %c0_78], %307 {strides = array<i32>} : memref<16x32xf32, #tpu.memory_space<vmem>>, vector<16x32xf32>,
    %c0_79 = arith.constant 0 : index
    %c0_80 = arith.constant 0 : index
    %327 = vector.load %arg17[%c0_79, %c0_80] : memref<16x32xf32, #tpu.memory_space<vmem>>, vector<16x32xf32>
    tpu.vector_store %arg17[%c0_79, %c0_80], %323 {strides = array<i32>} : memref<16x32xf32, #tpu.memory_space<vmem>>, vector<16x32xf32>,
    %c0_81 = arith.constant 0 : index
    %c0_82 = arith.constant 0 : index
    %328 = vector.load %arg18[%c0_81, %c0_82] : memref<16x1xf32, #tpu.memory_space<vmem>>, vector<16x1xf32>
    tpu.vector_store %arg18[%c0_81, %c0_82], %324 {strides = array<i32>} : memref<16x1xf32, #tpu.memory_space<vmem>>, vector<16x1xf32>,
    %c0_i32_83 = arith.constant 0 : i32
    %329 = arith.cmpi eq, %arg1, %c0_i32_83 : i32
    %330 = arith.extui %329 : i1 to i32
    %c0_i32_84 = arith.constant 0 : i32
    %331 = arith.cmpi ne, %330, %c0_i32_84 : i32
    scf.if %331 {
      %332 = vector.broadcast %324 : vector<16x1xf32> to vector<16x32xf32>
      %333 = arith.divf %323, %332 : vector<16x32xf32>
      %c0_85 = arith.constant 0 : index
      %c0_86 = arith.constant 0 : index
      %334 = vector.load %arg8[%c0_85, %c0_86] : memref<32x16xf32, #tpu.memory_space<vmem>>, vector<32x16xf32>
      %cst_87 = arith.constant dense<0.000000e+00> : vector<16x16xf32>
      %335 = tpu.matmul %333, %334, %cst_87 {dimension_numbers = #tpu.dot_dimension_numbers<[1], [0], [0], [1], [0, 0, 1, 1], [], []>} : vector<16x32xf32>, vector<32x16xf32>, vector<16x16xf32> -> vector<16x16xf32>
      %c0_88 = arith.constant 0 : index
      %c0_89 = arith.constant 0 : index
      %336 = vector.load %arg9[%c0_88, %c0_89] : memref<1x16xf32, #tpu.memory_space<vmem>>, vector<1x16xf32>
      %337 = vector.broadcast %336 : vector<1x16xf32> to vector<16x16xf32>
      %338 = arith.addf %335, %337 : vector<16x16xf32>
      %cst_90 = arith.constant 0.000000e+00 : f32
      %339 = vector.broadcast %cst_90 : f32 to vector<16x16xf32>
      %340 = arith.maximumf %338, %339 : vector<16x16xf32>
      %c0_91 = arith.constant 0 : index
      %c0_92 = arith.constant 0 : index
      %341 = vector.load %arg10[%c0_91, %c0_92] : memref<16x128xf32, #tpu.memory_space<vmem>>, vector<16x128xf32>
      %cst_93 = arith.constant dense<0.000000e+00> : vector<16x128xf32>
      %342 = tpu.matmul %340, %341, %cst_93 {dimension_numbers = #tpu.dot_dimension_numbers<[1], [0], [0], [1], [0, 0, 1, 1], [], []>} : vector<16x16xf32>, vector<16x128xf32>, vector<16x128xf32> -> vector<16x128xf32>
      %c0_94 = arith.constant 0 : index
      %c0_95 = arith.constant 0 : index
      %343 = vector.load %arg11[%c0_94, %c0_95] : memref<1x128xf32, #tpu.memory_space<vmem>>, vector<1x128xf32>
      %344 = vector.broadcast %343 : vector<1x128xf32> to vector<16x128xf32>
      %345 = arith.addf %342, %344 : vector<16x128xf32>
      %c0_96 = arith.constant 0 : index
      %c0_97 = arith.constant 0 : index
      %346 = vector.load %arg13[%c0_96, %c0_97] : memref<1x128xf32, #tpu.memory_space<vmem>>, vector<1x128xf32>
      %347 = vector.broadcast %346 : vector<1x128xf32> to vector<16x128xf32>
      %348 = arith.mulf %345, %347 : vector<16x128xf32>
      %c0_98 = arith.constant 0 : index
      %c0_99 = arith.constant 0 : index
      %349 = vector.load %arg12[%c0_98, %c0_99] : memref<1x128xf32, #tpu.memory_space<vmem>>, vector<1x128xf32>
      %350 = vector.broadcast %349 : vector<1x128xf32> to vector<16x128xf32>
      %351 = arith.addf %348, %350 : vector<16x128xf32>
      %c0_100 = arith.constant 0 : index
      %c0_101 = arith.constant 0 : index
      %352 = vector.load %arg14[%c0_100, %c0_101] : memref<16x128xf32, #tpu.memory_space<vmem>>, vector<16x128xf32>
      tpu.vector_store %arg14[%c0_100, %c0_101], %351 {strides = array<i32>} : memref<16x128xf32, #tpu.memory_space<vmem>>, vector<16x128xf32>,
    } else {
    }
    return
  }
  func.func @transform_0(%arg0: i32, %arg1: i32) -> (i32, i32, i32) {
    %c0_i32 = arith.constant 0 : i32
    %c0_i32_0 = arith.constant 0 : i32
    return %arg1, %arg0, %c0_i32 : i32, i32, i32
  }
  func.func @transform_1(%arg0: i32, %arg1: i32) -> (i32, i32) {
    %c0_i32 = arith.constant 0 : i32
    %c0_i32_0 = arith.constant 0 : i32
    return %arg0, %c0_i32 : i32, i32
  }
  func.func @transform_2(%arg0: i32, %arg1: i32) -> (i32, i32) {
    %c0_i32 = arith.constant 0 : i32
    %c0_i32_0 = arith.constant 0 : i32
    %c0_i32_1 = arith.constant 0 : i32
    return %c0_i32, %c0_i32_0 : i32, i32
  }
  func.func @transform_3(%arg0: i32, %arg1: i32) -> (i32, i32) {
    %c0_i32 = arith.constant 0 : i32
    %c0_i32_0 = arith.constant 0 : i32
    %c0_i32_1 = arith.constant 0 : i32
    return %c0_i32, %c0_i32_0 : i32, i32
  }
  func.func @transform_4(%arg0: i32, %arg1: i32) -> (i32, i32) {
    %c0_i32 = arith.constant 0 : i32
    %c0_i32_0 = arith.constant 0 : i32
    %c0_i32_1 = arith.constant 0 : i32
    return %c0_i32, %c0_i32_0 : i32, i32
  }
  func.func @transform_5(%arg0: i32, %arg1: i32) -> (i32, i32) {
    %c0_i32 = arith.constant 0 : i32
    %c0_i32_0 = arith.constant 0 : i32
    %c0_i32_1 = arith.constant 0 : i32
    return %c0_i32, %c0_i32_0 : i32, i32
  }
  func.func @transform_6(%arg0: i32, %arg1: i32) -> (i32, i32) {
    %c0_i32 = arith.constant 0 : i32
    %c0_i32_0 = arith.constant 0 : i32
    %c0_i32_1 = arith.constant 0 : i32
    return %c0_i32, %c0_i32_0 : i32, i32
  }
  func.func @transform_7(%arg0: i32, %arg1: i32) -> (i32, i32) {
    %c0_i32 = arith.constant 0 : i32
    %c0_i32_0 = arith.constant 0 : i32
    %c0_i32_1 = arith.constant 0 : i32
    return %c0_i32, %c0_i32_0 : i32, i32
  }
  func.func @transform_8(%arg0: i32, %arg1: i32) -> (i32, i32) {
    %c0_i32 = arith.constant 0 : i32
    %c0_i32_0 = arith.constant 0 : i32
    %c0_i32_1 = arith.constant 0 : i32
    return %c0_i32, %c0_i32_0 : i32, i32
  }
  func.func @transform_9(%arg0: i32, %arg1: i32) -> (i32, i32) {
    %c0_i32 = arith.constant 0 : i32
    %c0_i32_0 = arith.constant 0 : i32
    %c0_i32_1 = arith.constant 0 : i32
    return %c0_i32, %c0_i32_0 : i32, i32
  }
  func.func @transform_10(%arg0: i32, %arg1: i32) -> (i32, i32) {
    %c0_i32 = arith.constant 0 : i32
    %c0_i32_0 = arith.constant 0 : i32
    %c0_i32_1 = arith.constant 0 : i32
    return %c0_i32, %c0_i32_0 : i32, i32
  }
  func.func @transform_11(%arg0: i32, %arg1: i32) -> (i32, i32) {
    %c0_i32 = arith.constant 0 : i32
    %c0_i32_0 = arith.constant 0 : i32
    %c0_i32_1 = arith.constant 0 : i32
    return %c0_i32, %c0_i32_0 : i32, i32
  }
  func.func @transform_12(%arg0: i32, %arg1: i32) -> (i32, i32) {
    %c0_i32 = arith.constant 0 : i32
    %c0_i32_0 = arith.constant 0 : i32
    return %arg0, %c0_i32 : i32, i32
  }
}

</mosaic_0001>

<bundles_post_ra>
// kernel: tpu_custom_call.1
= control target key start
LH: loop header
LB: loop body
LE: loop exit
PB: predicated region body
PF: predicated region fallthrough
CT: control target
= control target key end

     0   :  { %vm165_vm0 = vcmask 1043456   ;;  %vm158_vm1 = vcmask 31744   ;;  %vm46_vm2 = vcmask 261120   ;;  %v3173_v8 = vmov 0.0   ;;  %s3743_s0 = inlined_call_operand.vmem [shape: f32[8,16,4], index: 0, kind: input, shape index: {}]   ;;  %s3744_s1 = inlined_call_operand.vmem [shape: s32[16,1], index: 1, kind: input, shape index: {}]   ;;  %s3745_s2 = inlined_call_operand.vmem [shape: f32[4,128], index: 2, kind: input, shape index: {}]   ;;  %s3746_s3 = inlined_call_operand.vmem [shape: f32[1,128], index: 3, kind: input, shape index: {}]   ;;  %s3747_s4 = inlined_call_operand.vmem [shape: f32[32,128], index: 4, kind: input, shape index: {}]   ;;  %s3748_s5 = inlined_call_operand.vmem [shape: f32[1,32], index: 5, kind: input, shape index: {}]   ;;  %s3749_s6 = inlined_call_operand.vmem [shape: f32[32,16], index: 6, kind: input, shape index: {}]   ;;  %s3750_s7 = inlined_call_operand.vmem [shape: f32[1,16], index: 7, kind: input, shape index: {}]   ;;  %s3751_s8 = inlined_call_operand.vmem [shape: f32[16,128], index: 8, kind: input, shape index: {}]   ;;  %s3752_s9 = inlined_call_operand.vmem [shape: f32[1,128], index: 9, kind: input, shape index: {}]   ;;  %s3753_s10 = inlined_call_operand.vmem [shape: f32[1,128], index: 10, kind: input, shape index: {}]   ;;  %s3754_s11 = inlined_call_operand.vmem [shape: f32[1,128], index: 11, kind: input, shape index: {}]   ;;  %s3755_s12 = inlined_call_operand.hbm [shape: f32[16,128], index: 12, kind: output, shape index: {}]  }
   0x1   :  { %v57_v0 = vld [vmem:[%s3747_s4] sm:$0xff]  ;;  %v58_v1 = vld [vmem:[%s3747_s4 + $0x8] sm:$0xff]  ;;  %v59_v2 = vld [vmem:[%s3747_s4 + $0x10] sm:$0xff]  ;;  %47 = vst.msk [vmem:[#allocation2] sm:$0xff] %vm46_vm2, %v3173_v8 }
   0x2   :  { %v3255_v3 = vpack.c.bf16 %v58_v1, %v57_v0  ;;  %v60_v4 = vld [vmem:[%s3747_s4 + $0x18] sm:$0xff]  ;;  %v3263_v5 = vld [vmem:[%s3745_s2] sm:$0xf]  ;;  %48 = vst.msk [vmem:[#allocation2 + $0x8] sm:$0xff] %vm46_vm2, %v3173_v8  ;;  %49 = vst.msk [vmem:[#allocation3] sm:$0xff] %vm46_vm2, %v3173_v8 }
   0x3   :  { %v74_v6 = vld [vmem:[%s3743_s0] sm:$0xff]  ;;  %v3268_v7 = vpack.c.bf16 %v60_v4, %v59_v2  ;;  %2716 = vmatprep.subr.msk.mxu1 %vm165_vm0, %v3263_v5  ;;  %50 = vst.msk [vmem:[#allocation3 + $0x8] sm:$0xff] %vm46_vm2, %v3173_v8  ;;  %51 = vst.msk [vmem:[#allocation4] sm:$0xff] %vm46_vm2, %v3173_v8  ;;  %v75_v9 = vld [vmem:[%s3743_s0 + $0x8] sm:$0xff] }
   0x4   :  { %2718 = vmatprep.mubr.msk.f32.mxu1 %vm158_vm1, %v74_v6  ;;  %52 = vst.msk [vmem:[#allocation4 + $0x8] sm:$0xff] %vm46_vm2, %v3173_v8 }
   0x5   :  { %17 = vsyncpa [#allocation7], 0  ;;  %2852 = vmatprep.subr.bf16.mxu0 %v3255_v3  ;;  %2717 = vmatpush3.msk.msra.mxu1 %vm165_vm0, %v3263_v5  ;;  %s3174_s15 = smov 32   ;;  %v3314_v17 = vld [vmem:[%s3746_s3] ss:$0 sm:$0xff]  ;;  %s3175_s3 = smov 64  }
   0x6   :  { %2854 = vmatpush3.bf16.msra.mxu0 %v3255_v3  ;;  %2719 = vmatmul.mubr.msk.f32.vlgmr.msra.gmra.mrb[0].mxu1 %vm158_vm1, %v75_v9  ;;  %v2538_v52 = vld [vmem:[%s3743_s0 + $0x10] sm:$0xff]  ;;  %v2539_v54 = vld [vmem:[%s3743_s0 + $0x18] sm:$0xff]  ;;  %vm53_vm3 = vcmask 7168  }
   0x7   :  { %2856 = vmatprep.subr.bf16.mxu0 %v3268_v7  ;;  %2860 = vmatprep.subr.bf16.mxu1 %v3255_v3  ;;  %55 = vst.msk [vmem:[#allocation5 + $0x8] sm:$0xff] %vm53_vm3, %v3173_v8  ;;  %54 = vst.msk [vmem:[#allocation5] sm:$0xff] %vm53_vm3, %v3173_v8 }
   0x8   :  { %2862 = vmatpush3.bf16.msra.mxu1 %v3255_v3  ;;  %v66_v10 = vld [vmem:[#allocation2] sm:$0xff] }
   0x9   :  { %2864 = vmatprep.subr.bf16.mxu1 %v3268_v7  ;;  %v67_v11 = vld [vmem:[#allocation2 + $0x8] sm:$0xff]  ;;  %v68_v12 = vld [vmem:[#allocation3] sm:$0xff]  ;;  %2713 = vmatprep.mubr.msk.f32.mxu0 %vm46_vm2, %v66_v10 }
   0xa   :  { %2858 = vmatpush3.bf16.msra.mxu0 %v3268_v7  ;;  %268 = vrot.lane.b32.xlu1 %v68_v12, %s3174_s15  ;;  %v69_v13 = vld [vmem:[#allocation3 + $0x8] sm:$0xff] }
   0xb   :  { %2868 = vmatprep.subr.bf16.mxu0 %v3255_v3 }
   0xc   :  { %2866 = vmatpush3.bf16.msra.mxu1 %v3268_v7 }
   0xd   :  { %2714 = vmatmul.mubr.msk.f32.vlgmr.msra.gmra.mrb[0].mxu0 %vm46_vm2, %v67_v11  ;;  %2732 = vmatprep.subr.msk.mxu1 %vm165_vm0, %v3263_v5 }
   0xe   :  { %2870 = vmatpush3.bf16.msra.mxu0 %v3255_v3  ;;  %270 = vrot.lane.b32.xlu1 %v69_v13, %s3174_s15 }
   0xf   :  { %2872 = vmatprep.subr.bf16.mxu0 %v3268_v7 }
  0x12   :  { %2874 = vmatpush3.bf16.msra.mxu0 %v3268_v7 }
  0x13   :  { %2748 = vmatprep.subr.msk.mxu0 %vm165_vm0, %v3263_v5 }
  0x7c   :  { %v269_v37 = vpop.permute.xlu1 %268 }
  0x80   :  { %v271_v39 = vpop.permute.xlu1 %270 }
  0xd9   :  { %v2720_v14 = vpop.f32.mrb[0].mxu1 }
  0xda   :  { %v235_v15 = vpop.f32.mrb[1].mxu1 }
  0xe0   :  { %v2715_v16 = vpop.f32.mrb[0].mxu0 }
  0xe1   :  { %v241_v18 = vadd.f32 %v2720_v14, %v2715_v16  ;;  %v149_v19 = vpop.f32.mrb[1].mxu0 }
  0xe2   :  { %v236_v20 = vadd.f32 %v235_v15, %v149_v19 }
  0xe3   :  { %v251_v22 = vadd.f32 %v3314_v17, %v241_v18 }
  0xe4   :  { %v250_v21 = vadd.f32 %v3314_v17, %v236_v20 }
  0xe5   :  { %v2534_v26 = vmul.f32 -1.442695, %v251_v22 }
  0xe6   :  { %2953 = vtanh.f32 %v250_v21  ;;  %v2533_v25 = vmul.f32 -1.442695, %v250_v21 }
  0xe7   :  { %2955 = vtanh.f32 %v251_v22 }
  0xe8   :  { %2957 = vpow2.f32 %v2533_v25 }
  0xe9   :  { %2959 = vpow2.f32 %v2534_v26 }
  0xf0   :  { %v2954_v23 = vpop.eup %2953 }
  0xf1   :  { %278 = vrot.lane.b32.xlu0 %v2954_v23, %s3174_s15  ;;  %v2956_v24 = vpop.eup %2955 }
  0xf2   :  { %v2958_v27 = vpop.eup %2957 }
  0xf3   :  { %v258_v28 = vadd.f32 1.0, %v2958_v27  ;;  %v2960_v29 = vpop.eup %2959  ;;  %v2549_v27 = vld [vmem:[%s3743_s0 + $0x20] sm:$0xff] }
  0xf4   :  { %v259_v30 = vadd.f32 1.0, %v2960_v29  ;;  %v2550_v29 = vld [vmem:[%s3743_s0 + $0x28] sm:$0xff] }
  0xf5   :  { %280 = vrot.lane.b32.xlu0 %v2956_v24, %s3174_s15  ;;  %2961 = vrcp.f32 %v258_v28 }
  0xf6   :  { %2963 = vrcp.f32 %v259_v30 }
  0xff   :  { %v2962_v31 = vpop.eup %2961 }
 0x100   :  { %v2964_v34 = vpop.eup %2963  ;;  %v274_v38 = vmul.f32 %v2962_v31, %v269_v37 }
 0x101   :  { %v275_v42 = vmul.f32 %v2964_v34, %v271_v39 }
 0x163   :  { %v279_v32 = vpop.permute.xlu0 %278 }
 0x164   :  { %v284_v33 = vmul.f32 %v2962_v31, %v279_v32 }
 0x166   :  { %288 = vrot.lane.b32.xlu0 %v284_v33, %s3174_s15 }
 0x167   :  { %v281_v35 = vpop.permute.xlu0 %280 }
 0x168   :  { %v285_v36 = vmul.f32 %v2964_v34, %v281_v35 }
 0x16a   :  { %290 = vrot.lane.b32.xlu1 %v285_v36, %s3174_s15 }
 0x1d8   :  { %v289_v40 = vpop.permute.xlu0 %288 }
 0x1d9   :  { %v294_v41 = vadd.f32 %v289_v40, %v274_v38 }
 0x1db   :  { %2965 = vtanh.f32 %v294_v41 }
 0x1dc   :  { %v291_v43 = vpop.permute.xlu1 %290 }
 0x1dd   :  { %v295_v44 = vadd.f32 %v291_v43, %v275_v42 }
 0x1df   :  { %2967 = vtanh.f32 %v295_v44 }
 0x1e5   :  { %v2966_v45 = vpop.eup %2965 }
 0x1e6   :  { %300 = vrot.lane.b32.xlu0 %v2966_v45, %s3174_s15 }
 0x1e9   :  { %v2968_v46 = vpop.eup %2967 }
 0x1ea   :  { %302 = vrot.lane.b32.xlu1 %v2968_v46, %s3174_s15 }
 0x258   :  { %v301_v47 = vpop.permute.xlu0 %300 }
 0x259   :  { %v3324_v48 = vmul.f32 %v2962_v31, %v301_v47 }
 0x25b   :  { %372 = vrot.lane.b32.xlu0 %v3324_v48, %s3175_s3 }
 0x25c   :  { %v303_v49 = vpop.permute.xlu1 %302 }
 0x25d   :  { %v3328_v50 = vmul.f32 %v2964_v34, %v303_v49 }
 0x25f   :  { %374 = vrot.lane.b32.xlu1 %v3328_v50, %s3175_s3 }
 0x2cd   :  { %v373_v51 = vpop.permute.xlu0 %372 }
 0x2ce   :  { %2729 = vmatprep.mubr.msk.f32.mxu1 %vm46_vm2, %v373_v51 }
 0x2d1   :  { %v375_v53 = vpop.permute.xlu1 %374 }
 0x2d2   :  { %2730 = vmatmul.mubr.msk.f32.vlgmr.msra.gmra.mrb[2].mxu1 %vm46_vm2, %v375_v53 }
 0x2d3   :  { %2733 = vmatpush3.msk.msra.mxu1 %vm165_vm0, %v3263_v5  ;;  %2734 = vmatprep.mubr.msk.f32.mxu1 %vm158_vm1, %v2538_v52 }
 0x2d4   :  { %2876 = vmatprep.subr.bf16.mxu1 %v3255_v3 }
 0x2da   :  { %2735 = vmatmul.mubr.msk.f32.vlgmr.msra.gmra.mrb[2].mxu1 %vm158_vm1, %v2539_v54 }
 0x2db   :  { %2878 = vmatpush3.bf16.msra.mxu1 %v3255_v3 }
 0x2dc   :  { %2880 = vmatprep.subr.bf16.mxu1 %v3268_v7 }
 0x2df   :  { %2882 = vmatpush3.bf16.msra.mxu1 %v3268_v7 }
 0x2e0   :  { %2764 = vmatprep.subr.msk.mxu1 %vm165_vm0, %v3263_v5 }
 0x3ad   :  { %v2736_v55 = vpop.f32.mrb[2].mxu1 }
 0x3ae   :  { %v537_v56 = vadd.f32 %v2736_v55, %v3314_v17  ;;  %v527_v57 = vpop.f32.mrb[3].mxu1 }
 0x3af   :  { %v536_v58 = vadd.f32 %v3314_v17, %v527_v57 }
 0x3b0   :  { %2969 = vtanh.f32 %v537_v56  ;;  %v2546_v61 = vmul.f32 -1.442695, %v537_v56 }
 0x3b1   :  { %2971 = vtanh.f32 %v536_v58  ;;  %v2545_v62 = vmul.f32 -1.442695, %v536_v58 }
 0x3b2   :  { %2973 = vpow2.f32 %v2546_v61 }
 0x3b3   :  { %2975 = vpow2.f32 %v2545_v62 }
 0x3ba   :  { %v2970_v59 = vpop.eup %2969 }
 0x3bb   :  { %v2972_v60 = vpop.eup %2971  ;;  %558 = vrot.lane.b32.xlu1 %v2970_v59, %s3174_s15 }
 0x3bc   :  { %556 = vrot.lane.b32.xlu0 %v2972_v60, %s3174_s15  ;;  %v2974_v63 = vpop.eup %2973 }
 0x3bd   :  { %v2976_v0 = vpop.eup %2975  ;;  %v545_v1 = vadd.f32 1.0, %v2974_v63  ;;  %v2560_v63 = vld [vmem:[%s3743_s0 + $0x30] sm:$0xff] }
 0x3be   :  { %v544_v2 = vadd.f32 1.0, %v2976_v0 }
 0x3bf   :  { %2977 = vrcp.f32 %v545_v1  ;;  %v2561_v1 = vld [vmem:[%s3743_s0 + $0x38] sm:$0xff] }
 0x3c0   :  { %2979 = vrcp.f32 %v544_v2 }
 0x3c9   :  { %v2978_v4 = vpop.eup %2977 }
 0x3ca   :  { %v2980_v9 = vpop.eup %2979  ;;  %v553_v13 = vmul.f32 %v2978_v4, %v295_v44 }
 0x3cb   :  { %v552_v15 = vmul.f32 %v2980_v9, %v294_v41 }
 0x42d   :  { %v559_v6 = vpop.permute.xlu1 %558 }
 0x42e   :  { %v563_v10 = vmul.f32 %v2978_v4, %v559_v6  ;;  %v557_v11 = vpop.permute.xlu0 %556 }
 0x42f   :  { %v562_v12 = vmul.f32 %v2980_v9, %v557_v11 }
 0x430   :  { %568 = vrot.lane.b32.xlu1 %v563_v10, %s3174_s15 }
 0x431   :  { %566 = vrot.lane.b32.xlu0 %v562_v12, %s3174_s15 }
 0x4a2   :  { %v569_v14 = vpop.permute.xlu1 %568 }
 0x4a3   :  { %v573_v16 = vadd.f32 %v569_v14, %v553_v13  ;;  %v567_v18 = vpop.permute.xlu0 %566 }
 0x4a4   :  { %v572_v19 = vadd.f32 %v567_v18, %v552_v15 }
 0x4a5   :  { %2981 = vtanh.f32 %v573_v16 }
 0x4a6   :  { %2983 = vtanh.f32 %v572_v19 }
 0x4af   :  { %v2982_v20 = vpop.eup %2981 }
 0x4b0   :  { %v2984_v21 = vpop.eup %2983  ;;  %580 = vrot.lane.b32.xlu1 %v2982_v20, %s3174_s15 }
 0x4b1   :  { %578 = vrot.lane.b32.xlu0 %v2984_v21, %s3174_s15 }
 0x522   :  { %v581_v22 = vpop.permute.xlu1 %580 }
 0x523   :  { %v3358_v23 = vmul.f32 %v2978_v4, %v581_v22  ;;  %v579_v24 = vpop.permute.xlu0 %578 }
 0x524   :  { %v3360_v25 = vmul.f32 %v2980_v9, %v579_v24 }
 0x525   :  { %645 = vrot.lane.b32.xlu1 %v3358_v23, %s3175_s3 }
 0x526   :  { %643 = vrot.lane.b32.xlu0 %v3360_v25, %s3175_s3 }
 0x597   :  { %v646_v28 = vpop.permute.xlu1 %645 }
 0x598   :  { %v644_v26 = vpop.permute.xlu0 %643 }
 0x599   :  { %2745 = vmatprep.mubr.msk.f32.mxu0 %vm46_vm2, %v644_v26 }
 0x59a   :  { %2746 = vmatmul.mubr.msk.f32.vlgmr.msra.gmra.mrb[2].mxu0 %vm46_vm2, %v646_v28 }
 0x59b   :  { %2749 = vmatpush3.msk.msra.mxu0 %vm165_vm0, %v3263_v5  ;;  %2750 = vmatprep.mubr.msk.f32.mxu0 %vm158_vm1, %v2549_v27 }
 0x59c   :  { %2884 = vmatprep.subr.bf16.mxu0 %v3255_v3 }
 0x5a2   :  { %2751 = vmatmul.mubr.msk.f32.vlgmr.msra.gmra.mrb[2].mxu0 %vm158_vm1, %v2550_v29 }
 0x5a3   :  { %2886 = vmatpush3.bf16.msra.mxu0 %v3255_v3 }
 0x5a4   :  { %2888 = vmatprep.subr.bf16.mxu0 %v3268_v7 }
 0x5a7   :  { %2890 = vmatpush3.bf16.msra.mxu0 %v3268_v7 }
 0x5a8   :  { %2780 = vmatprep.subr.msk.mxu0 %vm165_vm0, %v3263_v5 }
 0x675   :  { %v2752_v30 = vpop.f32.mrb[2].mxu0 }
 0x676   :  { %v808_v31 = vadd.f32 %v2752_v30, %v3314_v17  ;;  %v798_v32 = vpop.f32.mrb[3].mxu0 }
 0x677   :  { %v807_v33 = vadd.f32 %v3314_v17, %v798_v32 }
 0x678   :  { %2985 = vtanh.f32 %v808_v31  ;;  %v2557_v36 = vmul.f32 -1.442695, %v808_v31 }
 0x679   :  { %2987 = vtanh.f32 %v807_v33  ;;  %v2556_v37 = vmul.f32 -1.442695, %v807_v33 }
 0x67a   :  { %2989 = vpow2.f32 %v2557_v36 }
 0x67b   :  { %2991 = vpow2.f32 %v2556_v37 }
 0x682   :  { %v2986_v34 = vpop.eup %2985 }
 0x683   :  { %v2988_v35 = vpop.eup %2987  ;;  %829 = vrot.lane.b32.xlu1 %v2986_v34, %s3174_s15 }
 0x684   :  { %827 = vrot.lane.b32.xlu0 %v2988_v35, %s3174_s15  ;;  %v2990_v38 = vpop.eup %2989 }
 0x685   :  { %v2992_v39 = vpop.eup %2991  ;;  %v816_v40 = vadd.f32 1.0, %v2990_v38 }
 0x686   :  { %v815_v41 = vadd.f32 1.0, %v2992_v39 }
 0x687   :  { %2993 = vrcp.f32 %v816_v40  ;;  %v2571_v40 = vld [vmem:[%s3743_s0 + $0x40] sm:$0xff] }
 0x688   :  { %2995 = vrcp.f32 %v815_v41 }
 0x691   :  { %v2994_v42 = vpop.eup %2993 }
 0x692   :  { %v2996_v44 = vpop.eup %2995  ;;  %v824_v49 = vmul.f32 %v2994_v42, %v573_v16 }
 0x693   :  { %v823_v52 = vmul.f32 %v2996_v44, %v572_v19 }
 0x6f5   :  { %v830_v43 = vpop.permute.xlu1 %829 }
 0x6f6   :  { %v834_v45 = vmul.f32 %v2994_v42, %v830_v43  ;;  %v828_v46 = vpop.permute.xlu0 %827 }
 0x6f7   :  { %v833_v47 = vmul.f32 %v2996_v44, %v828_v46 }
 0x6f8   :  { %839 = vrot.lane.b32.xlu1 %v834_v45, %s3174_s15 }
 0x6f9   :  { %837 = vrot.lane.b32.xlu0 %v833_v47, %s3174_s15 }
 0x76a   :  { %v840_v51 = vpop.permute.xlu1 %839 }
 0x76b   :  { %v844_v53 = vadd.f32 %v840_v51, %v824_v49  ;;  %v838_v54 = vpop.permute.xlu0 %837 }
 0x76c   :  { %v843_v55 = vadd.f32 %v838_v54, %v823_v52 }
 0x76d   :  { %2997 = vtanh.f32 %v844_v53 }
 0x76e   :  { %2999 = vtanh.f32 %v843_v55 }
 0x777   :  { %v2998_v56 = vpop.eup %2997 }
 0x778   :  { %v3000_v57 = vpop.eup %2999  ;;  %851 = vrot.lane.b32.xlu1 %v2998_v56, %s3174_s15 }
 0x779   :  { %849 = vrot.lane.b32.xlu0 %v3000_v57, %s3174_s15 }
 0x7ea   :  { %v852_v58 = vpop.permute.xlu1 %851 }
 0x7eb   :  { %v3392_v59 = vmul.f32 %v2994_v42, %v852_v58  ;;  %v850_v60 = vpop.permute.xlu0 %849  ;;  %v2572_v42 = vld [vmem:[%s3743_s0 + $0x48] sm:$0xff] }
 0x7ec   :  { %v3394_v61 = vmul.f32 %v2996_v44, %v850_v60 }
 0x7ed   :  { %916 = vrot.lane.b32.xlu1 %v3392_v59, %s3175_s3 }
 0x7ee   :  { %914 = vrot.lane.b32.xlu0 %v3394_v61, %s3175_s3 }
 0x85f   :  { %v917_v0 = vpop.permute.xlu1 %916 }
 0x860   :  { %v915_v62 = vpop.permute.xlu0 %914 }
 0x861   :  { %2761 = vmatprep.mubr.msk.f32.mxu1 %vm46_vm2, %v915_v62 }
 0x862   :  { %2762 = vmatmul.mubr.msk.f32.vlgmr.msra.gmra.mrb[4].mxu1 %vm46_vm2, %v917_v0 }
 0x863   :  { %2765 = vmatpush3.msk.msra.mxu1 %vm165_vm0, %v3263_v5  ;;  %2766 = vmatprep.mubr.msk.f32.mxu1 %vm158_vm1, %v2560_v63 }
 0x864   :  { %2892 = vmatprep.subr.bf16.mxu1 %v3255_v3 }
 0x86a   :  { %2767 = vmatmul.mubr.msk.f32.vlgmr.msra.gmra.mrb[4].mxu1 %vm158_vm1, %v2561_v1 }
 0x86b   :  { %2894 = vmatpush3.bf16.msra.mxu1 %v3255_v3 }
 0x86c   :  { %2896 = vmatprep.subr.bf16.mxu1 %v3268_v7 }
 0x86f   :  { %2898 = vmatpush3.bf16.msra.mxu1 %v3268_v7 }
 0x870   :  { %2796 = vmatprep.subr.msk.mxu1 %vm165_vm0, %v3263_v5 }
 0x93d   :  { %v2768_v2 = vpop.f32.mrb[4].mxu1 }
 0x93e   :  { %v1079_v4 = vadd.f32 %v2768_v2, %v3314_v17  ;;  %v1069_v6 = vpop.f32.mrb[5].mxu1 }
 0x93f   :  { %v1078_v9 = vadd.f32 %v3314_v17, %v1069_v6 }
 0x940   :  { %3001 = vtanh.f32 %v1079_v4  ;;  %v2568_v12 = vmul.f32 -1.442695, %v1079_v4 }
 0x941   :  { %3003 = vtanh.f32 %v1078_v9  ;;  %v2567_v13 = vmul.f32 -1.442695, %v1078_v9 }
 0x942   :  { %3005 = vpow2.f32 %v2568_v12 }
 0x943   :  { %3007 = vpow2.f32 %v2567_v13 }
 0x94a   :  { %v3002_v10 = vpop.eup %3001 }
 0x94b   :  { %v3004_v11 = vpop.eup %3003  ;;  %1100 = vrot.lane.b32.xlu1 %v3002_v10, %s3174_s15 }
 0x94c   :  { %1098 = vrot.lane.b32.xlu0 %v3004_v11, %s3174_s15  ;;  %v3006_v14 = vpop.eup %3005 }
 0x94d   :  { %v3008_v15 = vpop.eup %3007  ;;  %v1087_v16 = vadd.f32 1.0, %v3006_v14 }
 0x94e   :  { %v1086_v18 = vadd.f32 1.0, %v3008_v15 }
 0x94f   :  { %3009 = vrcp.f32 %v1087_v16 }
 0x950   :  { %3011 = vrcp.f32 %v1086_v18 }
 0x959   :  { %v3010_v19 = vpop.eup %3009 }
 0x95a   :  { %v3012_v21 = vpop.eup %3011  ;;  %v1095_v27 = vmul.f32 %v3010_v19, %v844_v53 }
 0x95b   :  { %v1094_v29 = vmul.f32 %v3012_v21, %v843_v55 }
 0x9bd   :  { %v1101_v20 = vpop.permute.xlu1 %1100 }
 0x9be   :  { %v1105_v22 = vmul.f32 %v3010_v19, %v1101_v20  ;;  %v1099_v24 = vpop.permute.xlu0 %1098 }
 0x9bf   :  { %v1104_v26 = vmul.f32 %v3012_v21, %v1099_v24 }
 0x9c0   :  { %1110 = vrot.lane.b32.xlu1 %v1105_v22, %s3174_s15 }
 0x9c1   :  { %1108 = vrot.lane.b32.xlu0 %v1104_v26, %s3174_s15 }
 0xa32   :  { %v1111_v28 = vpop.permute.xlu1 %1110 }
 0xa33   :  { %v1115_v30 = vadd.f32 %v1111_v28, %v1095_v27  ;;  %v1109_v31 = vpop.permute.xlu0 %1108 }
 0xa34   :  { %v1114_v32 = vadd.f32 %v1109_v31, %v1094_v29 }
 0xa35   :  { %3013 = vtanh.f32 %v1115_v30 }
 0xa36   :  { %3015 = vtanh.f32 %v1114_v32 }
 0xa3f   :  { %v3014_v33 = vpop.eup %3013 }
 0xa40   :  { %v3016_v34 = vpop.eup %3015  ;;  %1122 = vrot.lane.b32.xlu1 %v3014_v33, %s3174_s15 }
 0xa41   :  { %1120 = vrot.lane.b32.xlu0 %v3016_v34, %s3174_s15 }
 0xab2   :  { %v1123_v35 = vpop.permute.xlu1 %1122 }
 0xab3   :  { %v3426_v36 = vmul.f32 %v3010_v19, %v1123_v35  ;;  %v1121_v37 = vpop.permute.xlu0 %1120  ;;  %v2582_v19 = vld [vmem:[%s3743_s0 + $0x50] sm:$0xff] }
 0xab4   :  { %v3428_v38 = vmul.f32 %v3012_v21, %v1121_v37  ;;  %v2583_v21 = vld [vmem:[%s3743_s0 + $0x58] sm:$0xff] }
 0xab5   :  { %1187 = vrot.lane.b32.xlu1 %v3426_v36, %s3175_s3 }
 0xab6   :  { %1185 = vrot.lane.b32.xlu0 %v3428_v38, %s3175_s3 }
 0xb27   :  { %v1188_v41 = vpop.permute.xlu1 %1187 }
 0xb28   :  { %v1186_v39 = vpop.permute.xlu0 %1185 }
 0xb29   :  { %2777 = vmatprep.mubr.msk.f32.mxu0 %vm46_vm2, %v1186_v39 }
 0xb2a   :  { %2778 = vmatmul.mubr.msk.f32.vlgmr.msra.gmra.mrb[4].mxu0 %vm46_vm2, %v1188_v41 }
 0xb2b   :  { %2781 = vmatpush3.msk.msra.mxu0 %vm165_vm0, %v3263_v5  ;;  %2782 = vmatprep.mubr.msk.f32.mxu0 %vm158_vm1, %v2571_v40 }
 0xb2c   :  { %2900 = vmatprep.subr.bf16.mxu0 %v3255_v3 }
 0xb32   :  { %2783 = vmatmul.mubr.msk.f32.vlgmr.msra.gmra.mrb[4].mxu0 %vm158_vm1, %v2572_v42 }
 0xb33   :  { %2902 = vmatpush3.bf16.msra.mxu0 %v3255_v3 }
 0xb34   :  { %2904 = vmatprep.subr.bf16.mxu0 %v3268_v7 }
 0xb37   :  { %2906 = vmatpush3.bf16.msra.mxu0 %v3268_v7 }
 0xb38   :  { %2812 = vmatprep.subr.msk.mxu0 %vm165_vm0, %v3263_v5 }
 0xc05   :  { %v2784_v43 = vpop.f32.mrb[4].mxu0 }
 0xc06   :  { %v1350_v44 = vadd.f32 %v2784_v43, %v3314_v17  ;;  %v1340_v45 = vpop.f32.mrb[5].mxu0 }
 0xc07   :  { %v1349_v46 = vadd.f32 %v3314_v17, %v1340_v45 }
 0xc08   :  { %3017 = vtanh.f32 %v1350_v44  ;;  %v2579_v51 = vmul.f32 -1.442695, %v1350_v44 }
 0xc09   :  { %3019 = vtanh.f32 %v1349_v46  ;;  %v2578_v52 = vmul.f32 -1.442695, %v1349_v46 }
 0xc0a   :  { %3021 = vpow2.f32 %v2579_v51 }
 0xc0b   :  { %3023 = vpow2.f32 %v2578_v52 }
 0xc12   :  { %v3018_v47 = vpop.eup %3017 }
 0xc13   :  { %v3020_v49 = vpop.eup %3019  ;;  %1371 = vrot.lane.b32.xlu1 %v3018_v47, %s3174_s15 }
 0xc14   :  { %1369 = vrot.lane.b32.xlu0 %v3020_v49, %s3174_s15  ;;  %v3022_v53 = vpop.eup %3021 }
 0xc15   :  { %v3024_v54 = vpop.eup %3023  ;;  %v1358_v55 = vadd.f32 1.0, %v3022_v53 }
 0xc16   :  { %v1357_v56 = vadd.f32 1.0, %v3024_v54 }
 0xc17   :  { %3025 = vrcp.f32 %v1358_v55 }
 0xc18   :  { %3027 = vrcp.f32 %v1357_v56 }
 0xc21   :  { %v3026_v57 = vpop.eup %3025 }
 0xc22   :  { %v3028_v60 = vpop.eup %3027  ;;  %v1366_v1 = vmul.f32 %v3026_v57, %v1115_v30 }
 0xc23   :  { %v1365_v4 = vmul.f32 %v3028_v60, %v1114_v32 }
 0xc85   :  { %v1372_v58 = vpop.permute.xlu1 %1371 }
 0xc86   :  { %v1376_v62 = vmul.f32 %v3026_v57, %v1372_v58  ;;  %v1370_v63 = vpop.permute.xlu0 %1369 }
 0xc87   :  { %v1375_v0 = vmul.f32 %v3028_v60, %v1370_v63 }
 0xc88   :  { %1381 = vrot.lane.b32.xlu1 %v1376_v62, %s3174_s15 }
 0xc89   :  { %1379 = vrot.lane.b32.xlu0 %v1375_v0, %s3174_s15 }
 0xcfa   :  { %v1382_v2 = vpop.permute.xlu1 %1381 }
 0xcfb   :  { %v1386_v6 = vadd.f32 %v1382_v2, %v1366_v1  ;;  %v1380_v9 = vpop.permute.xlu0 %1379 }
 0xcfc   :  { %v1385_v10 = vadd.f32 %v1380_v9, %v1365_v4 }
 0xcfd   :  { %3029 = vtanh.f32 %v1386_v6 }
 0xcfe   :  { %3031 = vtanh.f32 %v1385_v10 }
 0xd07   :  { %v3030_v11 = vpop.eup %3029 }
 0xd08   :  { %v3032_v12 = vpop.eup %3031  ;;  %1393 = vrot.lane.b32.xlu1 %v3030_v11, %s3174_s15 }
 0xd09   :  { %1391 = vrot.lane.b32.xlu0 %v3032_v12, %s3174_s15 }
 0xd7a   :  { %v1394_v13 = vpop.permute.xlu1 %1393 }
 0xd7b   :  { %v3460_v14 = vmul.f32 %v3026_v57, %v1394_v13  ;;  %v1392_v15 = vpop.permute.xlu0 %1391  ;;  %v2593_v57 = vld [vmem:[%s3743_s0 + $0x60] sm:$0xff] }
 0xd7c   :  { %v3462_v16 = vmul.f32 %v3028_v60, %v1392_v15  ;;  %v2594_v60 = vld [vmem:[%s3743_s0 + $0x68] sm:$0xff] }
 0xd7d   :  { %1458 = vrot.lane.b32.xlu1 %v3460_v14, %s3175_s3 }
 0xd7e   :  { %1456 = vrot.lane.b32.xlu0 %v3462_v16, %s3175_s3 }
 0xdef   :  { %v1459_v20 = vpop.permute.xlu1 %1458 }
 0xdf0   :  { %v1457_v18 = vpop.permute.xlu0 %1456 }
 0xdf1   :  { %2793 = vmatprep.mubr.msk.f32.mxu1 %vm46_vm2, %v1457_v18 }
 0xdf2   :  { %2794 = vmatmul.mubr.msk.f32.vlgmr.msra.gmra.mrb[6].mxu1 %vm46_vm2, %v1459_v20 }
 0xdf3   :  { %2797 = vmatpush3.msk.msra.mxu1 %vm165_vm0, %v3263_v5  ;;  %2798 = vmatprep.mubr.msk.f32.mxu1 %vm158_vm1, %v2582_v19 }
 0xdf4   :  { %2908 = vmatprep.subr.bf16.mxu1 %v3255_v3 }
 0xdfa   :  { %2799 = vmatmul.mubr.msk.f32.vlgmr.msra.gmra.mrb[6].mxu1 %vm158_vm1, %v2583_v21 }
 0xdfb   :  { %2910 = vmatpush3.bf16.msra.mxu1 %v3255_v3 }
 0xdfc   :  { %2912 = vmatprep.subr.bf16.mxu1 %v3268_v7 }
 0xdff   :  { %2914 = vmatpush3.bf16.msra.mxu1 %v3268_v7 }
 0xe00   :  { %2828 = vmatprep.subr.msk.mxu1 %vm165_vm0, %v3263_v5 }
 0xecd   :  { %v2800_v22 = vpop.f32.mrb[6].mxu1 }
 0xece   :  { %v1621_v24 = vadd.f32 %v2800_v22, %v3314_v17  ;;  %v1611_v26 = vpop.f32.mrb[7].mxu1 }
 0xecf   :  { %v1620_v27 = vadd.f32 %v3314_v17, %v1611_v26 }
 0xed0   :  { %3033 = vtanh.f32 %v1621_v24  ;;  %v2590_v3 = vmul.f32 -1.442695, %v1621_v24 }
 0xed1   :  { %3035 = vtanh.f32 %v1620_v27  ;;  %v2589_v30 = vmul.f32 -1.442695, %v1620_v27 }
 0xed2   :  { %3037 = vpow2.f32 %v2590_v3 }
 0xed3   :  { %3039 = vpow2.f32 %v2589_v30 }
 0xeda   :  { %v3034_v28 = vpop.eup %3033 }
 0xedb   :  { %v3036_v29 = vpop.eup %3035  ;;  %1642 = vrot.lane.b32.xlu1 %v3034_v28, %s3174_s15 }
 0xedc   :  { %1640 = vrot.lane.b32.xlu0 %v3036_v29, %s3174_s15  ;;  %v3038_v7 = vpop.eup %3037 }
 0xedd   :  { %v3040_v31 = vpop.eup %3039  ;;  %v1629_v32 = vadd.f32 1.0, %v3038_v7 }
 0xede   :  { %v1628_v33 = vadd.f32 1.0, %v3040_v31 }
 0xedf   :  { %3041 = vrcp.f32 %v1629_v32 }
 0xee0   :  { %3043 = vrcp.f32 %v1628_v33 }
 0xee9   :  { %v3042_v34 = vpop.eup %3041 }
 0xeea   :  { %v3044_v37 = vpop.eup %3043  ;;  %v1637_v42 = vmul.f32 %v3042_v34, %v1386_v6 }
 0xeeb   :  { %v1636_v44 = vmul.f32 %v3044_v37, %v1385_v10 }
 0xf4d   :  { %v1643_v35 = vpop.permute.xlu1 %1642 }
 0xf4e   :  { %v1647_v39 = vmul.f32 %v3042_v34, %v1643_v35  ;;  %v1641_v40 = vpop.permute.xlu0 %1640 }
 0xf4f   :  { %v1646_v41 = vmul.f32 %v3044_v37, %v1641_v40  ;;  %v2605_v40 = vld [vmem:[%s3743_s0 + $0x78] sm:$0xff] }
 0xf50   :  { %1652 = vrot.lane.b32.xlu1 %v1647_v39, %s3174_s15 }
 0xf51   :  { %1650 = vrot.lane.b32.xlu0 %v1646_v41, %s3174_s15 }
 0xfc2   :  { %v1653_v43 = vpop.permute.xlu1 %1652 }
 0xfc3   :  { %v1657_v45 = vadd.f32 %v1653_v43, %v1637_v42  ;;  %v1651_v46 = vpop.permute.xlu0 %1650 }
 0xfc4   :  { %v1656_v47 = vadd.f32 %v1651_v46, %v1636_v44 }
 0xfc5   :  { %3045 = vtanh.f32 %v1657_v45 }
 0xfc6   :  { %3047 = vtanh.f32 %v1656_v47 }
 0xfcf   :  { %v3046_v49 = vpop.eup %3045 }
 0xfd0   :  { %v3048_v51 = vpop.eup %3047  ;;  %1664 = vrot.lane.b32.xlu1 %v3046_v49, %s3174_s15 }
 0xfd1   :  { %1662 = vrot.lane.b32.xlu0 %v3048_v51, %s3174_s15 }
0x1042   :  { %v1665_v52 = vpop.permute.xlu1 %1664 }
0x1043   :  { %v3494_v53 = vmul.f32 %v3042_v34, %v1665_v52  ;;  %v1663_v54 = vpop.permute.xlu0 %1662 }
0x1044   :  { %v3496_v55 = vmul.f32 %v3044_v37, %v1663_v54  ;;  %v2604_v37 = vld [vmem:[%s3743_s0 + $0x70] sm:$0xff]  ;;  %s3178_s0 = smov [#allocation6]  }
0x1045   :  { %1729 = vrot.lane.b32.xlu1 %v3494_v53, %s3175_s3  ;;  %s2516_s27 = sshll.u32 %s3178_s0, 4  ;;  %s2517_s27 = int_to_ptr.vmem [resolvable:$true] %s2516_s27 }
0x1046   :  { %1727 = vrot.lane.b32.xlu0 %v3496_v55, %s3175_s3  ;;  %p3154_p1 = scmp.lt.s32.totalorder %s2517_s27, %s2517_s27 }
0x10b7   :  { %v1730_v58 = vpop.permute.xlu1 %1729 }
0x10b8   :  { %v1728_v56 = vpop.permute.xlu0 %1727 }
0x10b9   :  { %2809 = vmatprep.mubr.msk.f32.mxu0 %vm46_vm2, %v1728_v56 }
0x10ba   :  { %2810 = vmatmul.mubr.msk.f32.vlgmr.msra.gmra.mrb[6].mxu0 %vm46_vm2, %v1730_v58 }
0x10bb   :  { %2813 = vmatpush3.msk.msra.mxu0 %vm165_vm0, %v3263_v5  ;;  %2814 = vmatprep.mubr.msk.f32.mxu0 %vm158_vm1, %v2593_v57 }
0x10c2   :  { %2815 = vmatmul.mubr.msk.f32.vlgmr.msra.gmra.mrb[6].mxu0 %vm158_vm1, %v2594_v60 }
0x1195   :  { %v2816_v62 = vpop.f32.mrb[6].mxu0 }
0x1196   :  { %v1892_v63 = vadd.f32 %v2816_v62, %v3314_v17  ;;  %v1882_v0 = vpop.f32.mrb[7].mxu0 }
0x1197   :  { %v1891_v1 = vadd.f32 %v3314_v17, %v1882_v0 }
0x1198   :  { %3049 = vtanh.f32 %v1892_v63  ;;  %v2601_v6 = vmul.f32 -1.442695, %v1892_v63  ;;  %v2535_v63 = vld [vmem:[%s3748_s5] ss:$0 sm:$0xff] }
0x1199   :  { %3051 = vtanh.f32 %v1891_v1  ;;  %v2600_v9 = vmul.f32 -1.442695, %v1891_v1 }
0x119a   :  { %3053 = vpow2.f32 %v2601_v6 }
0x119b   :  { %3055 = vpow2.f32 %v2600_v9 }
0x11a2   :  { %v3050_v2 = vpop.eup %3049 }
0x11a3   :  { %v3052_v4 = vpop.eup %3051  ;;  %1913 = vrot.lane.b32.xlu1 %v3050_v2, %s3174_s15 }
0x11a4   :  { %1911 = vrot.lane.b32.xlu0 %v3052_v4, %s3174_s15  ;;  %v3054_v10 = vpop.eup %3053 }
0x11a5   :  { %v3056_v11 = vpop.eup %3055  ;;  %v1900_v12 = vadd.f32 1.0, %v3054_v10 }
0x11a6   :  { %v1899_v13 = vadd.f32 1.0, %v3056_v11 }
0x11a7   :  { %3057 = vrcp.f32 %v1900_v12 }
0x11a8   :  { %3059 = vrcp.f32 %v1899_v13 }
0x11b1   :  { %v3058_v15 = vpop.eup %3057 }
0x11b2   :  { %v3060_v19 = vpop.eup %3059  ;;  %v1908_v24 = vmul.f32 %v3058_v15, %v1657_v45 }
0x11b3   :  { %v1907_v27 = vmul.f32 %v3060_v19, %v1656_v47 }
0x1215   :  { %v1914_v18 = vpop.permute.xlu1 %1913 }
0x1216   :  { %v1918_v20 = vmul.f32 %v3058_v15, %v1914_v18  ;;  %v1912_v21 = vpop.permute.xlu0 %1911 }
0x1217   :  { %v1917_v22 = vmul.f32 %v3060_v19, %v1912_v21 }
0x1218   :  { %1923 = vrot.lane.b32.xlu1 %v1918_v20, %s3174_s15 }
0x1219   :  { %1921 = vrot.lane.b32.xlu0 %v1917_v22, %s3174_s15 }
0x128a   :  { %v1924_v26 = vpop.permute.xlu1 %1923 }
0x128b   :  { %v1928_v28 = vadd.f32 %v1924_v26, %v1908_v24  ;;  %v1922_v29 = vpop.permute.xlu0 %1921 }
0x128c   :  { %v1927_v3 = vadd.f32 %v1922_v29, %v1907_v27 }
0x128d   :  { %3061 = vtanh.f32 %v1928_v28 }
0x128e   :  { %3063 = vtanh.f32 %v1927_v3 }
0x1297   :  { %v3062_v30 = vpop.eup %3061 }
0x1298   :  { %v3064_v7 = vpop.eup %3063  ;;  %1935 = vrot.lane.b32.xlu1 %v3062_v30, %s3174_s15 }
0x1299   :  { %1933 = vrot.lane.b32.xlu0 %v3064_v7, %s3174_s15 }
0x130a   :  { %v1936_v31 = vpop.permute.xlu1 %1935 }
0x130b   :  { %v3522_v32 = vmul.f32 %v3058_v15, %v1936_v31  ;;  %v1934_v33 = vpop.permute.xlu0 %1933 }
0x130c   :  { %v3524_v34 = vmul.f32 %v3060_v19, %v1934_v33 }
0x130d   :  { %2000 = vrot.lane.b32.xlu1 %v3522_v32, %s3175_s3 }
0x130e   :  { %1998 = vrot.lane.b32.xlu0 %v3524_v34, %s3175_s3 }
0x137f   :  { %v2001_v39 = vpop.permute.xlu1 %2000 }
0x1380   :  { %v1999_v35 = vpop.permute.xlu0 %1998 }
0x1381   :  { %2825 = vmatprep.mubr.msk.f32.mxu1 %vm46_vm2, %v1999_v35 }
0x1382   :  { %2826 = vmatmul.mubr.msk.f32.vlgmr.msra.gmra.mrb[8].mxu1 %vm46_vm2, %v2001_v39 }
0x1383   :  { %2829 = vmatpush3.msk.msra.mxu1 %vm165_vm0, %v3263_v5  ;;  %2830 = vmatprep.mubr.msk.f32.mxu1 %vm158_vm1, %v2604_v37 }
0x138a   :  { %2831 = vmatmul.mubr.msk.f32.vlgmr.msra.gmra.mrb[8].mxu1 %vm158_vm1, %v2605_v40 }
0x145d   :  { %v2832_v41 = vpop.f32.mrb[8].mxu1 }
0x145e   :  { %v2163_v42 = vadd.f32 %v2832_v41, %v3314_v17  ;;  %v2153_v43 = vpop.f32.mrb[9].mxu1 }
0x145f   :  { %v2162_v44 = vadd.f32 %v3314_v17, %v2153_v43 }
0x1460   :  { %3065 = vtanh.f32 %v2163_v42  ;;  %v2612_v5 = vmul.f32 -1.442695, %v2163_v42 }
0x1461   :  { %3067 = vtanh.f32 %v2162_v44  ;;  %v2611_v47 = vmul.f32 -1.442695, %v2162_v44 }
0x1462   :  { %3069 = vpow2.f32 %v2612_v5 }
0x1463   :  { %3071 = vpow2.f32 %v2611_v47 }
0x146a   :  { %v3066_v45 = vpop.eup %3065 }
0x146b   :  { %v3068_v46 = vpop.eup %3067  ;;  %2184 = vrot.lane.b32.xlu1 %v3066_v45, %s3174_s15 }
0x146c   :  { %2182 = vrot.lane.b32.xlu0 %v3068_v46, %s3174_s15  ;;  %v3070_v49 = vpop.eup %3069 }
0x146d   :  { %v3072_v51 = vpop.eup %3071  ;;  %v2171_v52 = vadd.f32 1.0, %v3070_v49 }
0x146e   :  { %v2170_v54 = vadd.f32 1.0, %v3072_v51 }
0x146f   :  { %3073 = vrcp.f32 %v2171_v52 }
0x1470   :  { %3075 = vrcp.f32 %v2170_v54 }
0x1479   :  { %v3074_v56 = vpop.eup %3073 }
0x147a   :  { %v3076_v57 = vpop.eup %3075  ;;  %v2179_v0 = vmul.f32 %v3074_v56, %v1928_v28 }
0x147b   :  { %v2178_v2 = vmul.f32 %v3076_v57, %v1927_v3 }
0x14dd   :  { %v2185_v17 = vpop.permute.xlu1 %2184 }
0x14de   :  { %v2189_v58 = vmul.f32 %v3074_v56, %v2185_v17  ;;  %v2183_v60 = vpop.permute.xlu0 %2182 }
0x14df   :  { %v2188_v62 = vmul.f32 %v3076_v57, %v2183_v60 }
0x14e0   :  { %2194 = vrot.lane.b32.xlu1 %v2189_v58, %s3174_s15 }
0x14e1   :  { %2192 = vrot.lane.b32.xlu0 %v2188_v62, %s3174_s15 }
0x14e5   :  { %313 = vrot.lane.b32.xlu0 %v2535_v63, %s3175_s3 }
0x1552   :  { %v2195_v1 = vpop.permute.xlu1 %2194 }
0x1553   :  { %v3552_v4 = vadd.f32 %v2195_v1, %v2179_v0  ;;  %v2193_v6 = vpop.permute.xlu0 %2192 }
0x1554   :  { %v3554_v9 = vadd.f32 %v2193_v6, %v2178_v2 }
0x1555   :  { %3077 = vtanh.f32 %v3552_v4 }
0x1556   :  { %3079 = vtanh.f32 %v3554_v9 }
0x1557   :  { %v314_v11 = vpop.permute.xlu0 %313 }
0x1558   :  { %v317_v13 = vmul.f32 %v314_v11, %v3328_v50  ;;  %v316_v15 = vmul.f32 %v314_v11, %v3324_v48  ;;  %v587_v18 = vmul.f32 %v3358_v23, %v314_v11  ;;  %v586_v19 = vmul.f32 %v3360_v25, %v314_v11 }
0x1559   :  { %v858_v20 = vmul.f32 %v3392_v59, %v314_v11  ;;  %v857_v21 = vmul.f32 %v3394_v61, %v314_v11  ;;  %v1129_v22 = vmul.f32 %v3426_v36, %v314_v11  ;;  %v1128_v24 = vmul.f32 %v3428_v38, %v314_v11 }
0x155a   :  { %v1400_v26 = vmul.f32 %v3460_v14, %v314_v11  ;;  %v1399_v27 = vmul.f32 %v3462_v16, %v314_v11  ;;  %v1671_v28 = vmul.f32 %v3494_v53, %v314_v11  ;;  %v1670_v29 = vmul.f32 %v3496_v55, %v314_v11 }
0x155b   :  { %v1942_v3 = vmul.f32 %v3522_v32, %v314_v11  ;;  %v1941_v30 = vmul.f32 %v3524_v34, %v314_v11 }
0x155f   :  { %v3078_v10 = vpop.eup %3077 }
0x1560   :  { %v3080_v12 = vpop.eup %3079  ;;  %2206 = vrot.lane.b32.xlu0 %v3078_v10, %s3174_s15 }
0x1561   :  { %2204 = vrot.lane.b32.xlu1 %v3080_v12, %s3174_s15 }
0x1564   :  { %322 = vrot.lane.b32.xlu0 %v317_v13, %s3175_s3 }
0x1565   :  { %320 = vrot.lane.b32.xlu1 %v316_v15, %s3175_s3  ;;  %v3176_v15 = vmov 0  }
0x1566   :  { %2952 = vset.pattern.permute.xlu1 %v3176_v15  ;;  %2951 = vset.pattern.permute.xlu0 %v3176_v15 }
0x1568   :  { %592 = vrot.lane.b32.xlu0 %v587_v18, %s3175_s3 }
0x1569   :  { %590 = vrot.lane.b32.xlu1 %v586_v19, %s3175_s3 }
0x156c   :  { %863 = vrot.lane.b32.xlu0 %v858_v20, %s3175_s3 }
0x156d   :  { %861 = vrot.lane.b32.xlu1 %v857_v21, %s3175_s3 }
0x1570   :  { %1134 = vrot.lane.b32.xlu0 %v1129_v22, %s3175_s3 }
0x1571   :  { %1132 = vrot.lane.b32.xlu1 %v1128_v24, %s3175_s3 }
0x1574   :  { %1405 = vrot.lane.b32.xlu0 %v1400_v26, %s3175_s3 }
0x1575   :  { %1403 = vrot.lane.b32.xlu1 %v1399_v27, %s3175_s3 }
0x1578   :  { %1676 = vrot.lane.b32.xlu0 %v1671_v28, %s3175_s3 }
0x1579   :  { %1674 = vrot.lane.b32.xlu1 %v1670_v29, %s3175_s3 }
0x157c   :  { %1947 = vrot.lane.b32.xlu0 %v1942_v3, %s3175_s3 }
0x157d   :  { %1945 = vrot.lane.b32.xlu1 %v1941_v30, %s3175_s3 }
0x15d2   :  { %v2207_v7 = vpop.permute.xlu0 %2206 }
0x15d3   :  { %v3588_v31 = vmul.f32 %v3074_v56, %v2207_v7  ;;  %v2205_v33 = vpop.permute.xlu1 %2204 }
0x15d4   :  { %v3590_v35 = vmul.f32 %v3076_v57, %v2205_v33 }
0x15d5   :  { %v2213_v37 = vmul.f32 %v3588_v31, %v314_v11 }
0x15d6   :  { %v2212_v39 = vmul.f32 %v3590_v35, %v314_v11  ;;  %v323_v41 = vpop.permute.xlu0 %322 }
0x15d7   :  { %2218 = vrot.lane.b32.xlu0 %v2213_v37, %s3175_s3  ;;  %v321_v40 = vpop.permute.xlu1 %320  ;;  %v329_v45 = vsel %vm46_vm2, %v323_v41, 0.0 }
0x15d8   :  { %2216 = vrot.lane.b32.xlu1 %v2212_v39, %s3175_s3  ;;  %v326_v49 = vsel %vm46_vm2, %v321_v40, 0.0 }
0x15da   :  { %v593_v43 = vpop.permute.xlu0 %592 }
0x15db   :  { %v591_v42 = vpop.permute.xlu1 %590  ;;  %v599_v56 = vsel %vm46_vm2, %v593_v43, 0.0  ;;  %v3619_v43 = vld [vmem:[%s3744_s1 + $0x8] sm:$0xff] }
0x15dc   :  { %v596_v47 = vsel %vm46_vm2, %v591_v42, 0.0  ;;  %vm2537_vm4 = vcmp.gt.s32.totalorder %v3619_v43, 0  ;;  %vm2548_vm7 = vcmp.gt.s32.totalorder %v3619_v43, 1  ;;  %vm2559_vm9 = vcmp.gt.s32.totalorder %v3619_v43, 2 }
0x15dd   :  { %vm2581_vm11 = vcmp.gt.s32.totalorder %v3619_v43, 4  ;;  %vm2570_vm12 = vcmp.gt.s32.totalorder %v3619_v43, 3  ;;  %vm2592_vm13 = vcmp.gt.s32.totalorder %v3619_v43, 5  ;;  %vm2603_vm15 = vcmp.gt.s32.totalorder %v3619_v43, 6 }
0x15de   :  { %v864_v46 = vpop.permute.xlu0 %863 }
0x15df   :  { %v862_v44 = vpop.permute.xlu1 %861  ;;  %v870_v57 = vsel %vm46_vm2, %v864_v46, 0.0 }
0x15e0   :  { %v867_v51 = vsel %vm46_vm2, %v862_v44, 0.0 }
0x15e2   :  { %v1135_v52 = vpop.permute.xlu0 %1134 }
0x15e3   :  { %v1133_v5 = vpop.permute.xlu1 %1132  ;;  %v1141_v63 = vsel %vm46_vm2, %v1135_v52, 0.0 }
0x15e4   :  { %v1138_v17 = vsel %vm46_vm2, %v1133_v5, 0.0 }
0x15e6   :  { %v1406_v58 = vpop.permute.xlu0 %1405 }
0x15e7   :  { %v1404_v54 = vpop.permute.xlu1 %1403  ;;  %v1412_v6 = vsel %vm46_vm2, %v1406_v58, 0.0 }
0x15e8   :  { %v1409_v62 = vsel %vm46_vm2, %v1404_v54, 0.0 }
0x15ea   :  { %v1677_v1 = vpop.permute.xlu0 %1676 }
0x15eb   :  { %v1675_v60 = vpop.permute.xlu1 %1674  ;;  %v1683_v11 = vsel %vm46_vm2, %v1677_v1, 0.0 }
0x15ec   :  { %v1680_v0 = vsel %vm46_vm2, %v1675_v60, 0.0 }
0x15ee   :  { %v1948_v12 = vpop.permute.xlu0 %1947 }
0x15ef   :  { %v1946_v2 = vpop.permute.xlu1 %1945  ;;  %v1954_v13 = vsel %vm46_vm2, %v1948_v12, 0.0 }
0x15f0   :  { %v1951_v10 = vsel %vm46_vm2, %v1946_v2, 0.0 }
0x15f6   :  { %330 = vadd.xlane.f32.xlu0 %v329_v45 }
0x15fa   :  { %597 = vadd.xlane.f32.xlu0 %v596_v47  ;;  %v3625_v47 = vld [vmem:[%s3744_s1] sm:$0xff] }
0x15fb   :  { %vm2547_vm5 = vcmp.gt.s32.totalorder %v3625_v47, 1  ;;  %vm2536_vm6 = vcmp.gt.s32.totalorder %v3625_v47, 0  ;;  %vm2558_vm8 = vcmp.gt.s32.totalorder %v3625_v47, 2  ;;  %vm2569_vm10 = vcmp.gt.s32.totalorder %v3625_v47, 3 }
0x15fc   :  { %327 = vadd.xlane.f32.xlu1 %v326_v49  ;;  %vm2580_vm14 = vcmp.gt.s32.totalorder %v3625_v47, 4  ;;  %vm2591_vm0 = vcmp.gt.s32.totalorder %v3625_v47, 5  ;;  %vm2602_vm1 = vcmp.gt.s32.totalorder %v3625_v47, 6 }
0x15fe   :  { %868 = vadd.xlane.f32.xlu0 %v867_v51 }
0x1600   :  { %600 = vadd.xlane.f32.xlu1 %v599_v56 }
0x1602   :  { %1139 = vadd.xlane.f32.xlu0 %v1138_v17 }
0x1604   :  { %871 = vadd.xlane.f32.xlu1 %v870_v57 }
0x1606   :  { %1410 = vadd.xlane.f32.xlu0 %v1409_v62  ;;  %v72_v62 = vld [vmem:[#allocation5] sm:$0xff] }
0x1608   :  { %1142 = vadd.xlane.f32.xlu1 %v1141_v63 }
0x160a   :  { %1681 = vadd.xlane.f32.xlu0 %v1680_v0 }
0x160c   :  { %1413 = vadd.xlane.f32.xlu1 %v1412_v6 }
0x160e   :  { %1952 = vadd.xlane.f32.xlu0 %v1951_v10 }
0x1610   :  { %1684 = vadd.xlane.f32.xlu1 %v1683_v11 }
0x1614   :  { %1955 = vadd.xlane.f32.xlu1 %v1954_v13 }
0x1649   :  { %v2219_v18 = vpop.permute.xlu0 %2218 }
0x164a   :  { %v2217_v19 = vpop.permute.xlu1 %2216  ;;  %v2225_v20 = vsel %vm46_vm2, %v2219_v18, 0.0 }
0x164b   :  { %2226 = vadd.xlane.f32.xlu1 %v2225_v20  ;;  %v2222_v21 = vsel %vm46_vm2, %v2217_v19, 0.0 }
0x164c   :  { %2223 = vadd.xlane.f32.xlu0 %v2222_v21 }
0x1683   :  { %v331_v22 = vpop.xlane.xlu0 %330 }
0x1684   :  { %3081 = vtanh.f32 %v331_v22 }
0x1687   :  { %v598_v24 = vpop.xlane.xlu0 %597 }
0x1688   :  { %3083 = vtanh.f32 %v598_v24 }
0x1689   :  { %v328_v26 = vpop.xlane.xlu1 %327 }
0x168a   :  { %3085 = vtanh.f32 %v328_v26 }
0x168b   :  { %v869_v27 = vpop.xlane.xlu0 %868 }
0x168c   :  { %3087 = vtanh.f32 %v869_v27 }
0x168d   :  { %v601_v8 = vpop.xlane.xlu1 %600 }
0x168e   :  { %v3082_v28 = vpop.eup %3081  ;;  %3089 = vtanh.f32 %v601_v8 }
0x168f   :  { %v339_v29 = vmul.f32 1.442695, %v3082_v28  ;;  %v1140_v3 = vpop.xlane.xlu0 %1139 }
0x1691   :  { %3091 = vpow2.f32 %v339_v29  ;;  %v872_v30 = vpop.xlane.xlu1 %871 }
0x1692   :  { %v3084_v7 = vpop.eup %3083  ;;  %3093 = vtanh.f32 %v872_v30 }
0x1693   :  { %v608_v33 = vmul.f32 1.442695, %v3084_v7  ;;  %3095 = vtanh.f32 %v1140_v3  ;;  %v1411_v40 = vpop.xlane.xlu0 %1410 }
0x1694   :  { %v3086_v37 = vpop.eup %3085 }
0x1695   :  { %3097 = vpow2.f32 %v608_v33  ;;  %v337_v39 = vmul.f32 1.442695, %v3086_v37  ;;  %v1143_v41 = vpop.xlane.xlu1 %1142 }
0x1696   :  { %v3088_v42 = vpop.eup %3087 }
0x1697   :  { %3099 = vpow2.f32 %v337_v39  ;;  %v879_v45 = vmul.f32 1.442695, %v3088_v42  ;;  %v1682_v51 = vpop.xlane.xlu0 %1681 }
0x1698   :  { %v3090_v44 = vpop.eup %3089  ;;  %3101 = vtanh.f32 %v1143_v41 }
0x1699   :  { %v610_v46 = vmul.f32 1.442695, %v3090_v44  ;;  %v1414_v5 = vpop.xlane.xlu1 %1413 }
0x169a   :  { %3103 = vtanh.f32 %v1414_v5 }
0x169b   :  { %v3092_v49 = vpop.eup %3091  ;;  %3105 = vpow2.f32 %v610_v46  ;;  %v1953_v1 = vpop.xlane.xlu0 %1952 }
0x169c   :  { %v3094_v52 = vpop.eup %3093  ;;  %3107 = vtanh.f32 %v1411_v40  ;;  %v3627_v54 = vsel %vm2537_vm4, %v3092_v49, 0.0  ;;  %vm2614_vm4 = vcmp.gt.s32.totalorder %v3619_v43, 7 }
0x169d   :  { %3109 = vpow2.f32 %v879_v45  ;;  %v881_v56 = vmul.f32 1.442695, %v3094_v52  ;;  %350 = vperm.xlu1 %2952, %v3627_v54   ;;  %v1685_v17 = vpop.xlane.xlu1 %1684  ;;  %v3096_v57 = vpop.eup %3095 }
0x169e   :  { %3111 = vtanh.f32 %v1685_v17  ;;  %v1150_v0 = vmul.f32 1.442695, %v3096_v57 }
0x169f   :  { %v3098_v58 = vpop.eup %3097  ;;  %3113 = vtanh.f32 %v1682_v51 }
0x16a0   :  { %v612_v60 = vsel %vm2547_vm5, %v3098_v58, 0.0  ;;  %3115 = vpow2.f32 %v881_v56  ;;  %vm2613_vm5 = vcmp.gt.s32.totalorder %v3625_v47, 7 }
0x16a1   :  { %v3100_v63 = vpop.eup %3099  ;;  %616 = vperm.xlu1 %2952, %v612_v60   ;;  %v1956_v2 = vpop.xlane.xlu1 %1955 }
0x16a2   :  { %v3102_v6 = vpop.eup %3101  ;;  %3117 = vtanh.f32 %v1956_v2  ;;  %v341_v10 = vsel %vm2536_vm6, %v3100_v63, 0.0 }
0x16a3   :  { %345 = vperm.xlu0 %2951, %v341_v10   ;;  %v365_v11 = vadd.f32 %v341_v10, %v72_v62  ;;  %3119 = vtanh.f32 %v1953_v1  ;;  %v1152_v15 = vmul.f32 1.442695, %v3102_v6  ;;  %v73_v1 = vld [vmem:[#allocation5 + $0x8] sm:$0xff] }
0x16a4   :  { %v3104_v12 = vpop.eup %3103  ;;  %3121 = vpow2.f32 %v1150_v0  ;;  %v366_v10 = vadd.f32 %v3627_v54, %v73_v1 }
0x16a5   :  { %v3106_v13 = vpop.eup %3105  ;;  %v1423_v18 = vmul.f32 1.442695, %v3104_v12  ;;  %v3633_v19 = vadd.f32 %v612_v60, %v365_v11 }
0x16a6   :  { %v3108_v20 = vpop.eup %3107  ;;  %v3635_v21 = vsel %vm2548_vm7, %v3106_v13, 0.0 }
0x16a7   :  { %v3110_v22 = vpop.eup %3109  ;;  %3123 = vpow2.f32 %v1423_v18  ;;  %621 = vperm.xlu1 %2952, %v3635_v21   ;;  %v1421_v26 = vmul.f32 1.442695, %v3108_v20  ;;  %v637_v13 = vadd.f32 %v3635_v21, %v366_v10 }
0x16a8   :  { %v3112_v24 = vpop.eup %3111  ;;  %3125 = vpow2.f32 %v1152_v15  ;;  %v883_v28 = vsel %vm2558_vm8, %v3110_v22, 0.0 }
0x16a9   :  { %v1694_v27 = vmul.f32 1.442695, %v3112_v24  ;;  %v3114_v8 = vpop.eup %3113  ;;  %v907_v15 = vadd.f32 %v883_v28, %v3633_v19 }
0x16aa   :  { %v3116_v29 = vpop.eup %3115  ;;  %v1692_v30 = vmul.f32 1.442695, %v3114_v8 }
0x16ab   :  { %3127 = vpow2.f32 %v1694_v27  ;;  %887 = vperm.xlu1 %2952, %v883_v28   ;;  %v884_v37 = vsel %vm2559_vm9, %v3116_v29, 0.0 }
0x16ac   :  { %v3118_v3 = vpop.eup %3117  ;;  %3129 = vpow2.f32 %v1421_v26  ;;  %v908_v18 = vadd.f32 %v884_v37, %v637_v13 }
0x16ad   :  { %v1965_v7 = vmul.f32 1.442695, %v3118_v3  ;;  %v3120_v33 = vpop.eup %3119 }
0x16ae   :  { %v3122_v39 = vpop.eup %3121  ;;  %v1963_v41 = vmul.f32 1.442695, %v3120_v33 }
0x16af   :  { %3131 = vpow2.f32 %v1965_v7  ;;  %892 = vperm.xlu1 %2952, %v884_v37   ;;  %v1154_v42 = vsel %vm2569_vm10, %v3122_v39, 0.0 }
0x16b0   :  { %3133 = vpow2.f32 %v1692_v30  ;;  %v1178_v22 = vadd.f32 %v1154_v42, %v907_v15 }
0x16b1   :  { %v3124_v40 = vpop.eup %3123  ;;  %3135 = vpow2.f32 %v1963_v41 }
0x16b2   :  { %v1426_v44 = vsel %vm2581_vm11, %v3124_v40, 0.0  ;;  %v3126_v45 = vpop.eup %3125 }
0x16b3   :  { %1158 = vperm.xlu1 %2952, %v1154_v42   ;;  %1434 = vperm.xlu0 %2951, %v1426_v44   ;;  %v1155_v5 = vsel %vm2570_vm12, %v3126_v45, 0.0 }
0x16b4   :  { %v1179_v20 = vadd.f32 %v1155_v5, %v908_v18 }
0x16b5   :  { %v3128_v46 = vpop.eup %3127 }
0x16b6   :  { %v1697_v49 = vsel %vm2592_vm13, %v3128_v46, 0.0  ;;  %v3130_v51 = vpop.eup %3129  ;;  %v1450_v24 = vadd.f32 %v1426_v44, %v1179_v20 }
0x16b7   :  { %1163 = vperm.xlu1 %2952, %v1155_v5   ;;  %1705 = vperm.xlu0 %2951, %v1697_v49   ;;  %v1425_v56 = vsel %vm2580_vm14, %v3130_v51, 0.0 }
0x16b8   :  { %v1449_v26 = vadd.f32 %v1425_v56, %v1178_v22  ;;  %v1721_v27 = vadd.f32 %v1697_v49, %v1450_v24  ;;  %v71_v24 = vld [vmem:[#allocation4 + $0x8] sm:$0xff] }
0x16b9   :  { %v3132_v52 = vpop.eup %3131 }
0x16ba   :  { %v1968_v17 = vsel %vm2603_vm15, %v3132_v52, 0.0  ;;  %v3134_v57 = vpop.eup %3133 }
0x16bb   :  { %1429 = vperm.xlu1 %2952, %v1425_v56   ;;  %1976 = vperm.xlu0 %2951, %v1968_v17   ;;  %v1696_v58 = vsel %vm2591_vm0, %v3134_v57, 0.0  ;;  %v3136_v60 = vpop.eup %3135  ;;  %v1992_v29 = vadd.f32 %v1968_v17, %v1721_v27 }
0x16bc   :  { %v1967_v62 = vsel %vm2602_vm1, %v3136_v60, 0.0  ;;  %v1720_v8 = vadd.f32 %v1696_v58, %v1449_v26  ;;  %v70_v26 = vld [vmem:[#allocation4] sm:$0xff] }
0x16be   :  { %v1991_v30 = vadd.f32 %v1967_v62, %v1720_v8 }
0x16bf   :  { %1700 = vperm.xlu1 %2952, %v1696_v58  }
0x16c3   :  { %1971 = vperm.xlu1 %2952, %v1967_v62  }
0x16d8   :  { %v2227_v63 = vpop.xlane.xlu1 %2226 }
0x16d9   :  { %3137 = vtanh.f32 %v2227_v63  ;;  %v2224_v0 = vpop.xlane.xlu0 %2223 }
0x16da   :  { %3139 = vtanh.f32 %v2224_v0 }
0x16e3   :  { %v3138_v2 = vpop.eup %3137 }
0x16e4   :  { %v3140_v6 = vpop.eup %3139  ;;  %v2236_v11 = vmul.f32 1.442695, %v3138_v2 }
0x16e5   :  { %v2234_v12 = vmul.f32 1.442695, %v3140_v6 }
0x16e6   :  { %3141 = vpow2.f32 %v2236_v11 }
0x16e7   :  { %3143 = vpow2.f32 %v2234_v12 }
0x16f0   :  { %v3142_v54 = vpop.eup %3141 }
0x16f1   :  { %v3144_v3 = vpop.eup %3143  ;;  %v2239_v21 = vsel %vm2614_vm4, %v3142_v54, 0.0 }
0x16f2   :  { %2247 = vperm.xlu0 %2951, %v2239_v21   ;;  %v2263_v7 = vadd.f32 %v2239_v21, %v1992_v29  ;;  %v2238_v19 = vsel %vm2613_vm5, %v3144_v3, 0.0 }
0x16f3   :  { %v2262_v28 = vadd.f32 %v2238_v19, %v1991_v30  ;;  %2242 = vperm.xlu1 %2952, %v2238_v19  }
0x16f4   :  { %2288 = vst.msk [vmem:[#allocation5 + $0x8] sm:$0xff] %vm53_vm3, %v2263_v7 }
0x16f5   :  { %2287 = vst.msk [vmem:[#allocation5] sm:$0xff] %vm53_vm3, %v2262_v28 }
0x171c   :  { %v351_v33 = vpop.permute.xlu1 %350 }
0x171d   :  { %v354_v43 = vmul.f32 %v351_v33, %v3328_v50 }
0x171f   :  { %359 = vrot.lane.b32.xlu0 %v354_v43, %s3175_s3 }
0x1720   :  { %v617_v47 = vpop.permute.xlu1 %616 }
0x1721   :  { %v624_v41 = vmul.f32 %v617_v47, %v3360_v25 }
0x1722   :  { %v346_v37 = vpop.permute.xlu0 %345 }
0x1723   :  { %v353_v39 = vmul.f32 %v346_v37, %v3324_v48 }
0x1725   :  { %357 = vrot.lane.b32.xlu1 %v353_v39, %s3175_s3 }
0x1726   :  { %v622_v40 = vpop.permute.xlu1 %621 }
0x1727   :  { %v625_v42 = vmul.f32 %v622_v40, %v3358_v23 }
0x1729   :  { %628 = vrot.lane.b32.xlu1 %v624_v41, %s3175_s3  ;;  %630 = vrot.lane.b32.xlu0 %v625_v42, %s3175_s3 }
0x172a   :  { %v888_v44 = vpop.permute.xlu1 %887 }
0x172b   :  { %v895_v50 = vmul.f32 %v888_v44, %v3394_v61 }
0x172d   :  { %899 = vrot.lane.b32.xlu1 %v895_v50, %s3175_s3 }
0x172e   :  { %v893_v45 = vpop.permute.xlu1 %892 }
0x172f   :  { %v896_v46 = vmul.f32 %v893_v45, %v3392_v59 }
0x1731   :  { %901 = vrot.lane.b32.xlu0 %v896_v46, %s3175_s3 }
0x1732   :  { %v1159_v48 = vpop.permute.xlu1 %1158  ;;  %v1435_v49 = vpop.permute.xlu0 %1434 }
0x1733   :  { %v1166_v5 = vmul.f32 %v1159_v48, %v3428_v38  ;;  %v1438_v56 = vmul.f32 %v1435_v49, %v3460_v14  ;;  %v2306_v14 = vld [vmem:[%s3749_s6] sm:$0xff] }
0x1735   :  { %1170 = vrot.lane.b32.xlu1 %v1166_v5, %s3175_s3 }
0x1736   :  { %v1164_v23 = vpop.permute.xlu1 %1163  ;;  %v1706_v59 = vpop.permute.xlu0 %1705 }
0x1737   :  { %v1167_v25 = vmul.f32 %v1164_v23, %v3426_v36  ;;  %v1709_v17 = vmul.f32 %v1706_v59, %v3494_v53  ;;  %v2401_v59 = vld [vmem:[%s3751_s8 + $0x8] sm:$0xff] }
0x1739   :  { %2294 = vperm.xlu1 %2952, %v2262_v28   ;;  %1172 = vrot.lane.b32.xlu0 %v1167_v25, %s3175_s3 }
0x173a   :  { %v1430_v61 = vpop.permute.xlu1 %1429  ;;  %v1977_v58 = vpop.permute.xlu0 %1976 }
0x173b   :  { %v1437_v51 = vmul.f32 %v1430_v61, %v3462_v16  ;;  %v1980_v16 = vmul.f32 %v1977_v58, %v3522_v32  ;;  %v2309_v32 = vld [vmem:[%s3749_s6 + $0x18] sm:$0xff] }
0x173d   :  { %2299 = vperm.xlu0 %2951, %v2263_v7   ;;  %1441 = vrot.lane.b32.xlu1 %v1437_v51, %s3175_s3  ;;  %v2400_v51 = vld [vmem:[%s3751_s8] sm:$0xff] }
0x173e   :  { %v1701_v52 = vpop.permute.xlu1 %1700 }
0x173f   :  { %v1708_v38 = vmul.f32 %v1701_v52, %v3496_v55  ;;  %v2307_v55 = vld [vmem:[%s3749_s6 + $0x8] sm:$0xff]  ;;  %v2923_v52 = vpack.c.bf16 %v2401_v59, %v2400_v51 }
0x1740   :  { %v2915_v53 = vpack.c.bf16 %v2307_v55, %v2306_v14  ;;  %v2618_v14 = vld [vmem:[%s3752_s9] ss:$0 sm:$0xff]  ;;  %s3149_s9 = scalar_lea.vmem %s2517_s27, 256 }
0x1741   :  { %1443 = vrot.lane.b32.xlu0 %v1438_v56, %s3175_s3  ;;  %1712 = vrot.lane.b32.xlu1 %v1708_v38, %s3175_s3  ;;  %v2615_v56 = vld [vmem:[%s3750_s7] ss:$0 sm:$0xff]  ;;  %p3150_p0 = scmp.ne.s32.totalorder %s2517_s27, %s3149_s9  ;;  %p3155_p2 = scmp.lt.s32.totalorder %s3149_s9, %s3149_s9 }
0x1742   :  { %v1972_v36 = vpop.permute.xlu1 %1971  ;;  %2916 = vmatprep.subr.bf16.mxu0 %v2915_v53  ;;  %2924 = vmatprep.subr.bf16.mxu1 %v2923_v52 }
0x1743   :  { %v1979_v57 = vmul.f32 %v1972_v36, %v3524_v34  ;;  %2918 = vmatpush3.bf16.msra.mxu0 %v2915_v53  ;;  %v2308_v34 = vld [vmem:[%s3749_s6 + $0x10] sm:$0xff]  ;;  %s3177_s6 = smov 96   ;;  %2926 = vmatpush3.bf16.msra.mxu1 %v2923_v52  ;;  %v2621_v53 = vld [vmem:[%s3754_s11] ss:$0 sm:$0xff]  ;;  %p3156_p3 = por %p3155_p2, %p3154_p1 }
0x1744   :  { %v2919_v60 = vpack.c.bf16 %v2309_v32, %v2308_v34 }
0x1745   :  { %1714 = vrot.lane.b32.xlu0 %v1709_v17, %s3175_s3  ;;  %1983 = vrot.lane.b32.xlu1 %v1979_v57, %s3175_s3  ;;  %p3157_p4 = pnand %p3156_p3, %p3150_p0 }
0x1746   :  { %2920 = vmatprep.subr.bf16.mxu0 %v2919_v60 }
0x1747   :  { %2922 = vmatpush3.bf16.msra.mxu0 %v2919_v60  ;;  %v2622_v60 = vld [vmem:[%s3753_s10] ss:$0 sm:$0xff] }
0x1749   :  { %1985 = vrot.lane.b32.xlu0 %v1980_v16, %s3175_s3 }
0x1771   :  { %v2248_v62 = vpop.permute.xlu0 %2247 }
0x1772   :  { %v2251_v63 = vmul.f32 %v2248_v62, %v3588_v31  ;;  %v2243_v0 = vpop.permute.xlu1 %2242 }
0x1773   :  { %v2250_v1 = vmul.f32 %v2243_v0, %v3590_v35 }
0x1774   :  { %2256 = vrot.lane.b32.xlu0 %v2251_v63, %s3175_s3 }
0x1775   :  { %2254 = vrot.lane.b32.xlu1 %v2250_v1, %s3175_s3 }
0x1778   :  { %2268 = vrot.lane.b32.xlu0 %v3588_v31, %s3175_s3 }
0x1779   :  { %2266 = vrot.lane.b32.xlu1 %v3590_v35, %s3175_s3 }
0x177c   :  { %2278 = vrot.lane.b32.xlu0 %v3552_v4, %s3177_s6 }
0x177d   :  { %2276 = vrot.lane.b32.xlu1 %v3554_v9, %s3177_s6 }
0x1791   :  { %v360_v6 = vpop.permute.xlu0 %359 }
0x1792   :  { %v364_v35 = vadd.f32 %v360_v6, %v71_v24 }
0x1797   :  { %v358_v2 = vpop.permute.xlu1 %357 }
0x1798   :  { %v363_v8 = vadd.f32 %v358_v2, %v70_v26 }
0x179b   :  { %v629_v10 = vpop.permute.xlu1 %628  ;;  %v631_v11 = vpop.permute.xlu0 %630 }
0x179c   :  { %v635_v54 = vadd.f32 %v631_v11, %v364_v35  ;;  %v634_v4 = vadd.f32 %v629_v10, %v363_v8 }
0x179f   :  { %v900_v13 = vpop.permute.xlu1 %899 }
0x17a0   :  { %v905_v30 = vadd.f32 %v900_v13, %v634_v4 }
0x17a3   :  { %v902_v12 = vpop.permute.xlu0 %901 }
0x17a4   :  { %v906_v9 = vadd.f32 %v902_v12, %v635_v54 }
0x17a7   :  { %v1171_v18 = vpop.permute.xlu1 %1170 }
0x17a8   :  { %v1176_v7 = vadd.f32 %v1171_v18, %v905_v30 }
0x17ab   :  { %v1173_v15 = vpop.permute.xlu0 %1172 }
0x17ac   :  { %v1177_v21 = vadd.f32 %v1173_v15, %v906_v9 }
0x17b8   :  { %v2295_v22 = vpop.permute.xlu1 %2294 }
0x17b9   :  { %3145 = vrcp.f32 %v2295_v22 }
0x17bc   :  { %v2300_v20 = vpop.permute.xlu0 %2299  ;;  %v1442_v27 = vpop.permute.xlu1 %1441 }
0x17bd   :  { %3147 = vrcp.f32 %v2300_v20  ;;  %v1447_v28 = vadd.f32 %v1442_v27, %v1176_v7 }
0x17c0   :  { %v1444_v31 = vpop.permute.xlu0 %1443  ;;  %v1713_v3 = vpop.permute.xlu1 %1712 }
0x17c1   :  { %v1448_v19 = vadd.f32 %v1444_v31, %v1177_v21  ;;  %v1718_v37 = vadd.f32 %v1713_v3, %v1447_v28 }
0x17c3   :  { %v3146_v45 = vpop.eup %3145 }
0x17c4   :  { %v1715_v29 = vpop.permute.xlu0 %1714  ;;  %v1984_v47 = vpop.permute.xlu1 %1983 }
0x17c5   :  { %v1719_v43 = vadd.f32 %v1715_v29, %v1448_v19  ;;  %v1989_v40 = vadd.f32 %v1984_v47, %v1718_v37 }
0x17c7   :  { %v3148_v46 = vpop.eup %3147 }
0x17c8   :  { %v1986_v33 = vpop.permute.xlu0 %1985 }
0x17c9   :  { %v1990_v39 = vadd.f32 %v1986_v33, %v1719_v43 }
0x17e6   :  { %v2257_v41 = vpop.permute.xlu0 %2256 }
0x17e7   :  { %v2261_v42 = vadd.f32 %v2257_v41, %v1990_v39  ;;  %v2255_v44 = vpop.permute.xlu1 %2254 }
0x17e8   :  { %v2260_v50 = vadd.f32 %v2255_v44, %v1989_v40 }
0x17e9   :  { %2285 = vst.msk [vmem:[#allocation4 + $0x8] sm:$0xff] %vm46_vm2, %v2261_v42  ;;  %v2305_v23 = vmul.f32 %v3148_v46, %v2261_v42 }
0x17ea   :  { %2284 = vst.msk [vmem:[#allocation4] sm:$0xff] %vm46_vm2, %v2260_v50  ;;  %v2303_v48 = vmul.f32 %v3146_v45, %v2260_v50  ;;  %v2269_v5 = vpop.permute.xlu0 %2268 }
0x17eb   :  { %2273 = vst.msk [vmem:[#allocation2 + $0x8] sm:$0xff] %vm46_vm2, %v2269_v5  ;;  %v2267_v25 = vpop.permute.xlu1 %2266 }
0x17ec   :  { %2272 = vst.msk [vmem:[#allocation2] sm:$0xff] %vm46_vm2, %v2267_v25  ;;  %2841 = vmatprep.mubr.msk.f32.mxu0 %vm46_vm2, %v2303_v48 }
0x17ed   :  { %2842 = vmatmul.mubr.msk.f32.vlgmr.msra.gmra.mrb[8].mxu0 %vm46_vm2, %v2305_v23 }
0x17ee   :  { %v2279_v49 = vpop.permute.xlu0 %2278 }
0x17ef   :  { %2283 = vst.msk [vmem:[#allocation3 + $0x8] sm:$0xff] %vm46_vm2, %v2279_v49  ;;  %v2277_v61 = vpop.permute.xlu1 %2276 }
0x17f0   :  { %2282 = vst.msk [vmem:[#allocation3] sm:$0xff] %vm46_vm2, %v2277_v61  ;;  %vm2409_vm2 = vcmask 130048  }
0x18c0   :  { %v2843_v38 = vpop.f32.mrb[8].mxu0 }
0x18c1   :  { %v2395_v36 = vadd.f32 %v2843_v38, %v2615_v56  ;;  %v2389_v17 = vpop.f32.mrb[9].mxu0 }
0x18c2   :  { %v2390_v57 = vadd.f32 %v2615_v56, %v2389_v17 }
0x18c3   :  { %v2399_v16 = vmax.f32 %v2395_v36, 0.0 }
0x18c4   :  { %v2398_v58 = vmax.f32 %v2390_v57, 0.0 }
0x18c6   :  { %2848 = vmatprep.mubr.msk.f32.mxu1 %vm2409_vm2, %v2398_v58 }
0x18c7   :  { %2849 = vmatmul.mubr.msk.f32.vlgmr.msra.gmra.mrb[10].mxu1 %vm2409_vm2, %v2399_v16 }
0x199a   :  { %v2850_v55 = vpop.f32.mrb[10].mxu1 }
0x199b   :  { %v2488_v34 = vadd.f32 %v2850_v55, %v2618_v14  ;;  %v2482_v32 = vpop.f32.mrb[11].mxu1 }
0x199c   :  { %v2483_v62 = vadd.f32 %v2618_v14, %v2482_v32 }
0x199d   :  { %v2499_v63 = vmul.f32 %v2621_v53, %v2488_v34 }
0x199e   :  { %v2498_v0 = vmul.f32 %v2621_v53, %v2483_v62 }
0x199f   :  { %v2508_v1 = vadd.f32 %v2622_v60, %v2499_v63 }
0x19a0   :  { %v2507_v2 = vadd.f32 %v2622_v60, %v2498_v0 }
0x19a1   :  { %2510 = vst [vmem:[#allocation6 + $0x8] sm:$0xff] %v2508_v1 }
0x19a2   :  { %2509 = vst [vmem:[#allocation6] sm:$0xff] %v2507_v2 }
0x19a3   :  { %3160 = shalt.err (!%p3157_p4)
}
0x19a4   :  { %s3161_s10 = scalar_lea.hbm %s3755_s12, 256 }
0x19a5   :  { %p3162_p5 = scmp.ne.s32.totalorder %s3755_s12, %s3161_s10  ;;  %p3165_p6 = scmp.lt.u32.totalorder %s3161_s10, %s3755_s12 }
0x19a7   :  { %p3167_p7 = pnand %p3165_p6, %p3162_p5 }
0x19a9   :  { %3170 = shalt.err (!%p3167_p7)
}
0x19aa   :  { %s3179_s30 = smov 128   ;;  %s3180_s13 = smov 8  }
0x19ab   :  { %2522 = dma.vmem_to_hbm [thread:$0]  %s2517_s27, 256, %s3755_s12, [#allocation7], %s3179_s30, %s3179_s30, %s3180_s13  }
0x19ac   :  { %3171 = dma.done.wait [#allocation7], 256  }
0x19ad   :  { %3172 = vsyncadd [#allocation7], 4294967040 }
0x19ae   :  { %2526 = vsyncpa [#allocation7], 1 }

</bundles_post_ra>
